<compile_context>
chip_gen: v5e
topology: v5e:2x2
jax: 0.10.0
libtpu: 0.0.40
codegen_flags: <defaults>
</compile_context>

<pallas_src>
import functools

import jax
import jax.numpy as jnp
from jax.experimental import pallas as pl
from jax.experimental.pallas import tpu as pltpu


# ----------------------------- config (tiny, synthetic) -----------------------------
VOCAB = 256
HIDDEN = 128
N_HEADS = 2
HEAD_DIM = HIDDEN // N_HEADS          # 64
INTERMEDIATE = 256
N_LAYERS = 2
RMS_EPS = 1e-6
ROPE_THETA = 10000.0


# ------------------------------- in-kernel helpers -----------------------------------
def _rms(x, w):
    """x: (M, H) f32, w: (1, H). RMSNorm in f32."""
    var = jnp.mean(x * x, axis=-1, keepdims=True)
    return x * jax.lax.rsqrt(var + RMS_EPS) * w.astype(jnp.float32)


def _rope(t, cos, sin):
    """HF 'rotate_half' RoPE. t, cos, sin: (S, DH) f32."""
    half = t.shape[-1] // 2
    t1 = t[:, :half]
    t2 = t[:, half:]
    return t * cos + jnp.concatenate([-t2, t1], axis=-1) * sin


# -------------------- fused whole-stack kernel: grid = (batch, layer) -----------------
def _stack_kernel(x_ref, ln1_ref, ln2_ref, wqkv_ref, bqkv_ref, wo_ref,
                  wgu_ref, wd_ref, cos_ref, sin_ref, mask_ref, o_ref, res_ref,
                  *, n_heads, head_dim, inter):
    l = pl.program_id(1)

    # Load the embedding into the resident VMEM residual stream at the first layer.
    @pl.when(l == 0)
    def _():
        res_ref[...] = x_ref[...].astype(jnp.float32)

    x = res_ref[...]                                        # (S, H) f32 residual

    # ---------------- attention block ----------------
    h = _rms(x, ln1_ref[...])
    # fused QKV projection, bias folded into the epilogue (bf16 MXU, f32 acc)
    qkv = jnp.dot(h.astype(jnp.bfloat16), wqkv_ref[...],
                  preferred_element_type=jnp.float32) + bqkv_ref[...]   # (S, 3H)

    cos = cos_ref[...]
    sin = sin_ref[...]
    bias = mask_ref[...]                                    # (S, S) causal+padding, additive
    scale = 1.0 / (head_dim ** 0.5)

    heads = []
    for hh in range(n_heads):                               # static unroll (tiny NH)
        q = _rope(qkv[:, hh * head_dim:(hh + 1) * head_dim], cos, sin)
        k = _rope(qkv[:, (n_heads + hh) * head_dim:(n_heads + hh + 1) * head_dim],
                  cos, sin)
        v = qkv[:, (2 * n_heads + hh) * head_dim:(2 * n_heads + hh + 1) * head_dim]
        # q @ k^T via dot_general contracting on DH (no explicit transpose)
        s = jax.lax.dot_general(q.astype(jnp.bfloat16), k.astype(jnp.bfloat16),
                                (((1,), (1,)), ((), ())),
                                preferred_element_type=jnp.float32) * scale + bias
        s_max = jnp.max(s, axis=-1, keepdims=True)
        p = jnp.exp(s - s_max)                              # f32 softmax (EUP exp)
        p = p * pl.reciprocal(jnp.sum(p, axis=-1, keepdims=True), approx=True)
        heads.append(jnp.dot(p.astype(jnp.bfloat16), v.astype(jnp.bfloat16),
                             preferred_element_type=jnp.float32))       # (S, DH)
    attn = jnp.concatenate(heads, axis=-1)                  # (S, H)
    x = x + jnp.dot(attn.astype(jnp.bfloat16), wo_ref[...],
                    preferred_element_type=jnp.float32)

    # ---------------- MLP block (SwiGLU) ----------------
    h2 = _rms(x, ln2_ref[...])
    gu = jnp.dot(h2.astype(jnp.bfloat16), wgu_ref[...],
                 preferred_element_type=jnp.float32)        # (S, 2I) fused gate/up
    g = gu[:, :inter]
    u = gu[:, inter:]
    act = g * jax.nn.sigmoid(g) * u                         # SiLU(gate) * up, f32
    x = x + jnp.dot(act.astype(jnp.bfloat16), wd_ref[...],
                    preferred_element_type=jnp.float32)

    res_ref[...] = x                                        # carry residual across layers

    @pl.when(l == pl.num_programs(1) - 1)
    def _():
        o_ref[...] = x.astype(o_ref.dtype)


def stack_pallas(x, params, cos, sin, mask, B, S):
    """x: (B*S, H) f32 residual stream. One pallas_call for all layers.
    Grid = (batch 'parallel', layer 'arbitrary'); residual kept in VMEM scratch."""
    H, I, L = HIDDEN, INTERMEDIATE, N_LAYERS
    kern = functools.partial(_stack_kernel, n_heads=N_HEADS,
                             head_dim=HEAD_DIM, inter=I)
    return pl.pallas_call(
        kern,
        out_shape=jax.ShapeDtypeStruct((B * S, H), jnp.float32),
        grid_spec=pltpu.PrefetchScalarGridSpec(
            num_scalar_prefetch=0,
            grid=(B, L),
            in_specs=[
                # per-batch rows; same block across l -> fetched once per batch
                pl.BlockSpec((S, H), lambda b, l: (b, 0)),
                # stacked per-layer weights; leading L dim squeezed out
                pl.BlockSpec((None, 1, H), lambda b, l: (l, 0, 0)),          # ln1
                pl.BlockSpec((None, 1, H), lambda b, l: (l, 0, 0)),          # ln2
                pl.BlockSpec((None, H, 3 * H), lambda b, l: (l, 0, 0)),      # wqkv (bf16)
                pl.BlockSpec((None, 1, 3 * H), lambda b, l: (l, 0, 0)),      # bqkv
                pl.BlockSpec((None, H, H), lambda b, l: (l, 0, 0)),          # wo (bf16)
                pl.BlockSpec((None, H, 2 * I), lambda b, l: (l, 0, 0)),      # wgu (bf16)
                pl.BlockSpec((None, I, H), lambda b, l: (l, 0, 0)),          # wd (bf16)
                # shared RoPE tables and per-batch additive mask
                pl.BlockSpec((S, HEAD_DIM), lambda b, l: (0, 0)),            # cos
                pl.BlockSpec((S, HEAD_DIM), lambda b, l: (0, 0)),            # sin
                pl.BlockSpec((None, S, S), lambda b, l: (b, 0, 0)),          # mask
            ],
            out_specs=pl.BlockSpec((S, H), lambda b, l: (b, 0)),
            scratch_shapes=[pltpu.VMEM((S, H), jnp.float32)],                # residual carry
        ),
        compiler_params=pltpu.CompilerParams(
            dimension_semantics=("parallel", "arbitrary")),
    )(x, params["ln1"], params["ln2"], params["wqkv"], params["bqkv"],
      params["wo"], params["wgu"], params["wd"], cos, sin, mask)


# -------------------- fused final-norm + lm_head + cross-entropy ----------------------
def _head_loss_kernel(x_ref, lnf_ref, wlm_ref, lbl_ref, logits_ref, stats_ref):
    x = x_ref[...].astype(jnp.float32)                      # (M, H)
    h = _rms(x, lnf_ref[...])
    logits = jnp.dot(h.astype(jnp.bfloat16), wlm_ref[...],
                     preferred_element_type=jnp.float32)    # (M, V)
    logits_ref[...] = logits

    lbl = lbl_ref[...]                                      # (M, 1) int32, -100 = ignore
    m = jnp.max(logits, axis=-1, keepdims=True)
    lse = jnp.log(jnp.sum(jnp.exp(logits - m), axis=-1, keepdims=True)) + m
    col = jax.lax.broadcasted_iota(jnp.int32, logits.shape, 1)
    tgt = jnp.sum(jnp.where(col == lbl, logits, 0.0), axis=-1, keepdims=True)
    valid = (lbl != -100).astype(jnp.float32)
    loss_sum = jnp.sum((lse - tgt) * valid)
    valid_sum = jnp.sum(valid)

    # lane-dense (1, 128) stats slab: [0,0]=sum(loss), [0,1]=sum(valid)
    lane = jax.lax.broadcasted_iota(jnp.int32, stats_ref.shape, 1)
    stats_ref[...] = (jnp.where(lane == 0, loss_sum, 0.0)
                      + jnp.where(lane == 1, valid_sum, 0.0))


def head_loss_pallas(x, lnf, wlm, shifted_labels):
    M, H = x.shape
    V = wlm.shape[1]
    return pl.pallas_call(
        _head_loss_kernel,
        out_shape=(jax.ShapeDtypeStruct((M, V), jnp.float32),
                   jax.ShapeDtypeStruct((1, 128), jnp.float32)),
        grid_spec=pl.GridSpec(
            grid=(1,),
            in_specs=[pl.BlockSpec((M, H), lambda i: (0, 0)),
                      pl.BlockSpec((1, H), lambda i: (0, 0)),
                      pl.BlockSpec((H, V), lambda i: (0, 0)),
                      pl.BlockSpec((M, 1), lambda i: (0, 0))],
            out_specs=[pl.BlockSpec((M, V), lambda i: (0, 0)),
                       pl.BlockSpec((1, 128), lambda i: (0, 0))]),
    )(x, lnf, wlm, shifted_labels)


# ------------------------------------ JAX glue ---------------------------------------
def init_params(key):
    def nrm(k, shape, dtype=jnp.bfloat16):
        return (0.02 * jax.random.normal(k, shape, dtype=jnp.float32)).astype(dtype)

    H, I, L, V = HIDDEN, INTERMEDIATE, N_LAYERS, VOCAB
    keys = jax.random.split(key, 3)
    lk = jax.random.split(keys[2], 4 * L)
    params = {
        "embed": 0.02 * jax.random.normal(keys[0], (V, H), jnp.float32),
        "lm_head": nrm(keys[1], (H, V)),
        "ln_f": jnp.ones((1, H), jnp.float32),
        # per-layer weights stacked on a leading L axis (streamed per grid step)
        "ln1": jnp.ones((L, 1, H), jnp.float32),
        "ln2": jnp.ones((L, 1, H), jnp.float32),
        "wqkv": jnp.stack([nrm(lk[4 * i + 0], (H, 3 * H)) for i in range(L)]),  # [Wq|Wk|Wv]
        "bqkv": jnp.zeros((L, 1, 3 * H), jnp.float32),
        "wo":   jnp.stack([nrm(lk[4 * i + 1], (H, H)) for i in range(L)]),
        "wgu":  jnp.stack([nrm(lk[4 * i + 2], (H, 2 * I)) for i in range(L)]),  # [Wgate|Wup]
        "wd":   jnp.stack([nrm(lk[4 * i + 3], (I, H)) for i in range(L)]),
    }
    return params


def checkpointed_model_forward(params, input_ids, attention_mask, labels):
    """Equivalent of CheckpointedModel.forward -> (loss, logits).
    checkpoint.checkpoint(use_reentrant=False) has identical forward semantics."""
    B, S = input_ids.shape
    H, DH, V = HIDDEN, HEAD_DIM, VOCAB

    # embedding gather (thin JAX glue).
    x = jnp.take(params["embed"], input_ids, axis=0).reshape(B * S, H)

    # combined additive causal + key-padding mask, computed once: (B, S, S)
    row = jnp.arange(S)[:, None]
    col = jnp.arange(S)[None, :]
    causal = jnp.where(col <= row, 0.0, -1e30).astype(jnp.float32)
    pad = (1.0 - attention_mask.astype(jnp.float32)) * -1e9
    mask = causal[None, :, :] + pad[:, None, :]

    # RoPE tables (S, DH), HF 'rotate_half' layout
    half = DH // 2
    inv_freq = 1.0 / (ROPE_THETA ** (jnp.arange(half, dtype=jnp.float32) / half))
    ang = jnp.arange(S, dtype=jnp.float32)[:, None] * inv_freq[None, :]
    cos = jnp.concatenate([jnp.cos(ang), jnp.cos(ang)], axis=-1)
    sin = jnp.concatenate([jnp.sin(ang), jnp.sin(ang)], axis=-1)

    # whole transformer stack in a single fused pallas_call
    x = stack_pallas(x, params, cos, sin, mask, B, S)

    # HF causal-LM loss: pair logits[b, s] with labels[b, s+1]; last pos ignored (-100).
    shifted = jnp.concatenate(
        [labels[:, 1:], jnp.full((B, 1), -100, jnp.int32)], axis=1).reshape(B * S, 1)

    logits_flat, stats = head_loss_pallas(x, params["ln_f"], params["lm_head"], shifted)
    logits = logits_flat.reshape(B, S, V)
    loss = stats[0, 0] / jnp.maximum(stats[0, 1], 1.0)
    return loss, logits


# --------------------------------------- main ----------------------------------------
if __name__ == "__main__":
    key = jax.random.PRNGKey(0)
    k_param, k_ids = jax.random.split(key)

    B, S = 2, 8
    params = init_params(k_param)

    input_ids = jax.random.randint(k_ids, (B, S), 0, VOCAB, dtype=jnp.int32)
    attention_mask = jnp.ones((B, S), jnp.int32).at[1, -2:].set(0)   # pad tail of item 1
    labels = jnp.where(attention_mask == 1, input_ids, -100).astype(jnp.int32)

    fwd = jax.jit(checkpointed_model_forward)
    loss, logits = fwd(params, input_ids, attention_mask, labels)
    jax.block_until_ready((loss, logits))

    assert logits.shape == (B, S, VOCAB)
    assert bool(jnp.isfinite(loss))
    print("KERNEL_OK")
</pallas_src>

<mosaic_0001>
module attributes {stable_mosaic.version = 11 : i64} {
  func.func @_stack_kernel(%arg0: i32, %arg1: i32, %arg2: memref<8x128xf32, #tpu.memory_space<vmem>>, %arg3: memref<1x1x128xf32, #tpu.memory_space<vmem>>, %arg4: memref<1x1x128xf32, #tpu.memory_space<vmem>>, %arg5: memref<1x128x384xbf16, #tpu.memory_space<vmem>>, %arg6: memref<1x1x384xf32, #tpu.memory_space<vmem>>, %arg7: memref<1x128x128xbf16, #tpu.memory_space<vmem>>, %arg8: memref<1x128x512xbf16, #tpu.memory_space<vmem>>, %arg9: memref<1x256x128xbf16, #tpu.memory_space<vmem>>, %arg10: memref<8x64xf32, #tpu.memory_space<vmem>>, %arg11: memref<8x64xf32, #tpu.memory_space<vmem>>, %arg12: memref<1x8x8xf32, #tpu.memory_space<vmem>>, %arg13: memref<8x128xf32, #tpu.memory_space<vmem>>, %arg14: memref<8x128xf32, #tpu.memory_space<vmem>>) attributes {dimension_semantics = [#tpu.dimension_semantics<parallel>, #tpu.dimension_semantics<arbitrary>], iteration_bounds = array<i64: 2, 2>, scalar_prefetch = 0 : i64, scratch_operands = 1 : i64, tpu.core_type = #tpu.core_type<tc>, window_params = [{transform_indices = @transform_0, window_bounds = array<i64: 8, 128>}, {transform_indices = @transform_1, window_bounds = array<i64: 1, 1, 128>}, {transform_indices = @transform_2, window_bounds = array<i64: 1, 1, 128>}, {transform_indices = @transform_3, window_bounds = array<i64: 1, 128, 384>}, {transform_indices = @transform_4, window_bounds = array<i64: 1, 1, 384>}, {transform_indices = @transform_5, window_bounds = array<i64: 1, 128, 128>}, {transform_indices = @transform_6, window_bounds = array<i64: 1, 128, 512>}, {transform_indices = @transform_7, window_bounds = array<i64: 1, 256, 128>}, {pipeline_mode = #tpu.pipeline_mode<synchronous>, transform_indices = @transform_8, window_bounds = array<i64: 8, 64>}, {pipeline_mode = #tpu.pipeline_mode<synchronous>, transform_indices = @transform_9, window_bounds = array<i64: 8, 64>}, {transform_indices = @transform_10, window_bounds = array<i64: 1, 8, 8>}, {transform_indices = @transform_11, window_bounds = array<i64: 8, 128>}]} {
    %c0_i32 = arith.constant 0 : i32
    %0 = arith.cmpi eq, %arg1, %c0_i32 : i32
    %1 = arith.extui %0 : i1 to i32
    %c0_i32_0 = arith.constant 0 : i32
    %2 = arith.cmpi ne, %1, %c0_i32_0 : i32
    scf.if %2 {
      %c0_57 = arith.constant 0 : index
      %c0_58 = arith.constant 0 : index
      %148 = vector.load %arg2[%c0_57, %c0_58] : memref<8x128xf32, #tpu.memory_space<vmem>>, vector<8x128xf32>
      %c0_59 = arith.constant 0 : index
      %c0_60 = arith.constant 0 : index
      %149 = vector.load %arg14[%c0_59, %c0_60] : memref<8x128xf32, #tpu.memory_space<vmem>>, vector<8x128xf32>
      tpu.vector_store %arg14[%c0_59, %c0_60], %148 {strides = array<i32>} : memref<8x128xf32, #tpu.memory_space<vmem>>, vector<8x128xf32>,
    } else {
    }
    %c0 = arith.constant 0 : index
    %c0_1 = arith.constant 0 : index
    %3 = vector.load %arg14[%c0, %c0_1] : memref<8x128xf32, #tpu.memory_space<vmem>>, vector<8x128xf32>
    %c0_2 = arith.constant 0 : index
    %c0_3 = arith.constant 0 : index
    %c0_4 = arith.constant 0 : index
    %4 = vector.load %arg3[%c0_2, %c0_3, %c0_4] : memref<1x1x128xf32, #tpu.memory_space<vmem>>, vector<1x1x128xf32>
    %5 = vector.shape_cast %4 : vector<1x1x128xf32> to vector<1x128xf32>
    %6 = arith.mulf %3, %3 : vector<8x128xf32>
    %cst = arith.constant dense<0.000000e+00> : vector<8xf32>
    %7 = vector.multi_reduction <add>, %6, %cst [1] : vector<8x128xf32> to vector<8xf32>
    %8 = vector.shape_cast %7 : vector<8xf32> to vector<8x1xf32>
    %cst_5 = arith.constant 1.280000e+02 : f32
    %9 = vector.broadcast %cst_5 : f32 to vector<8x1xf32>
    %10 = arith.divf %8, %9 : vector<8x1xf32>
    %cst_6 = arith.constant 9.99999997E-7 : f32
    %11 = vector.broadcast %cst_6 : f32 to vector<8x1xf32>
    %12 = arith.addf %10, %11 : vector<8x1xf32>
    %13 = math.rsqrt %12 : vector<8x1xf32>
    %14 = vector.broadcast %13 : vector<8x1xf32> to vector<8x128xf32>
    %15 = arith.mulf %3, %14 : vector<8x128xf32>
    %16 = vector.broadcast %5 : vector<1x128xf32> to vector<8x128xf32>
    %17 = arith.mulf %15, %16 : vector<8x128xf32>
    %18 = arith.truncf %17 : vector<8x128xf32> to vector<8x128xbf16>
    %c0_7 = arith.constant 0 : index
    %c0_8 = arith.constant 0 : index
    %c0_9 = arith.constant 0 : index
    %19 = vector.load %arg5[%c0_7, %c0_8, %c0_9] : memref<1x128x384xbf16, #tpu.memory_space<vmem>>, vector<1x128x384xbf16>
    %20 = vector.shape_cast %19 : vector<1x128x384xbf16> to vector<128x384xbf16>
    %cst_10 = arith.constant dense<0.000000e+00> : vector<8x384xf32>
    %21 = tpu.matmul %18, %20, %cst_10 {dimension_numbers = #tpu.dot_dimension_numbers<[1], [0], [0], [1], [0, 0, 1, 1], [], []>} : vector<8x128xbf16>, vector<128x384xbf16>, vector<8x384xf32> -> vector<8x384xf32>
    %c0_11 = arith.constant 0 : index
    %c0_12 = arith.constant 0 : index
    %c0_13 = arith.constant 0 : index
    %22 = vector.load %arg6[%c0_11, %c0_12, %c0_13] : memref<1x1x384xf32, #tpu.memory_space<vmem>>, vector<1x1x384xf32>
    %23 = vector.shape_cast %22 : vector<1x1x384xf32> to vector<1x384xf32>
    %24 = vector.broadcast %23 : vector<1x384xf32> to vector<8x384xf32>
    %25 = arith.addf %21, %24 : vector<8x384xf32>
    %c0_14 = arith.constant 0 : index
    %c0_15 = arith.constant 0 : index
    %26 = vector.load %arg10[%c0_14, %c0_15] : memref<8x64xf32, #tpu.memory_space<vmem>>, vector<8x64xf32>
    %c0_16 = arith.constant 0 : index
    %c0_17 = arith.constant 0 : index
    %27 = vector.load %arg11[%c0_16, %c0_17] : memref<8x64xf32, #tpu.memory_space<vmem>>, vector<8x64xf32>
    %c0_18 = arith.constant 0 : index
    %c0_19 = arith.constant 0 : index
    %c0_20 = arith.constant 0 : index
    %28 = vector.load %arg12[%c0_18, %c0_19, %c0_20] : memref<1x8x8xf32, #tpu.memory_space<vmem>>, vector<1x8x8xf32>
    %29 = vector.shape_cast %28 : vector<1x8x8xf32> to vector<8x8xf32>
    %30 = vector.extract_strided_slice %25 {offsets = [0, 0], sizes = [8, 64], strides = [1, 1]} : vector<8x384xf32> to vector<8x64xf32>
    %31 = vector.extract_strided_slice %30 {offsets = [0, 0], sizes = [8, 32], strides = [1, 1]} : vector<8x64xf32> to vector<8x32xf32>
    %32 = vector.extract_strided_slice %30 {offsets = [0, 32], sizes = [8, 32], strides = [1, 1]} : vector<8x64xf32> to vector<8x32xf32>
    %33 = arith.mulf %30, %26 : vector<8x64xf32>
    %cst_21 = arith.constant 0.000000e+00 : f32
    %34 = vector.broadcast %cst_21 : f32 to vector<8x32xf32>
    %35 = arith.subf %34, %32 : vector<8x32xf32>
    %36 = tpu.concatenate %35, %31 in 1 : vector<8x32xf32>, vector<8x32xf32> -> vector<8x64xf32>
    %37 = arith.mulf %36, %27 : vector<8x64xf32>
    %38 = arith.addf %33, %37 : vector<8x64xf32>
    %39 = vector.extract_strided_slice %25 {offsets = [0, 128], sizes = [8, 64], strides = [1, 1]} : vector<8x384xf32> to vector<8x64xf32>
    %40 = vector.extract_strided_slice %39 {offsets = [0, 0], sizes = [8, 32], strides = [1, 1]} : vector<8x64xf32> to vector<8x32xf32>
    %41 = vector.extract_strided_slice %39 {offsets = [0, 32], sizes = [8, 32], strides = [1, 1]} : vector<8x64xf32> to vector<8x32xf32>
    %42 = arith.mulf %39, %26 : vector<8x64xf32>
    %cst_22 = arith.constant 0.000000e+00 : f32
    %43 = vector.broadcast %cst_22 : f32 to vector<8x32xf32>
    %44 = arith.subf %43, %41 : vector<8x32xf32>
    %45 = tpu.concatenate %44, %40 in 1 : vector<8x32xf32>, vector<8x32xf32> -> vector<8x64xf32>
    %46 = arith.mulf %45, %27 : vector<8x64xf32>
    %47 = arith.addf %42, %46 : vector<8x64xf32>
    %48 = vector.extract_strided_slice %25 {offsets = [0, 256], sizes = [8, 64], strides = [1, 1]} : vector<8x384xf32> to vector<8x64xf32>
    %49 = arith.truncf %38 : vector<8x64xf32> to vector<8x64xbf16>
    %50 = arith.truncf %47 : vector<8x64xf32> to vector<8x64xbf16>
    %cst_23 = arith.constant dense<0.000000e+00> : vector<8x8xf32>
    %51 = tpu.matmul %49, %50, %cst_23 {dimension_numbers = #tpu.dot_dimension_numbers<[1], [1], [0], [0], [0, 0, 1, 0], [], []>} : vector<8x64xbf16>, vector<8x64xbf16>, vector<8x8xf32> -> vector<8x8xf32>
    %cst_24 = arith.constant 1.250000e-01 : f32
    %52 = vector.broadcast %cst_24 : f32 to vector<8x8xf32>
    %53 = arith.mulf %51, %52 : vector<8x8xf32>
    %54 = arith.addf %53, %29 : vector<8x8xf32>
    %cst_25 = arith.constant dense<0xFF800000> : vector<8xf32>
    %55 = vector.multi_reduction <maximumf>, %54, %cst_25 [1] : vector<8x8xf32> to vector<8xf32>
    %56 = vector.shape_cast %55 : vector<8xf32> to vector<8x1xf32>
    %57 = vector.broadcast %56 : vector<8x1xf32> to vector<8x8xf32>
    %58 = arith.subf %54, %57 : vector<8x8xf32>
    %59 = math.exp %58 : vector<8x8xf32>
    %cst_26 = arith.constant dense<0.000000e+00> : vector<8xf32>
    %60 = vector.multi_reduction <add>, %59, %cst_26 [1] : vector<8x8xf32> to vector<8xf32>
    %61 = vector.shape_cast %60 : vector<8xf32> to vector<8x1xf32>
    %62 = tpu.reciprocal %61 {approx = true} : vector<8x1xf32> -> vector<8x1xf32>
    %63 = vector.broadcast %62 : vector<8x1xf32> to vector<8x8xf32>
    %64 = arith.mulf %59, %63 : vector<8x8xf32>
    %65 = arith.truncf %64 : vector<8x8xf32> to vector<8x8xbf16>
    %66 = arith.truncf %48 : vector<8x64xf32> to vector<8x64xbf16>
    %cst_27 = arith.constant dense<0.000000e+00> : vector<8x64xf32>
    %67 = tpu.matmul %65, %66, %cst_27 {dimension_numbers = #tpu.dot_dimension_numbers<[1], [0], [0], [1], [0, 0, 1, 1], [], []>} : vector<8x8xbf16>, vector<8x64xbf16>, vector<8x64xf32> -> vector<8x64xf32>
    %68 = vector.extract_strided_slice %25 {offsets = [0, 64], sizes = [8, 64], strides = [1, 1]} : vector<8x384xf32> to vector<8x64xf32>
    %69 = vector.extract_strided_slice %68 {offsets = [0, 0], sizes = [8, 32], strides = [1, 1]} : vector<8x64xf32> to vector<8x32xf32>
    %70 = vector.extract_strided_slice %68 {offsets = [0, 32], sizes = [8, 32], strides = [1, 1]} : vector<8x64xf32> to vector<8x32xf32>
    %71 = arith.mulf %68, %26 : vector<8x64xf32>
    %cst_28 = arith.constant 0.000000e+00 : f32
    %72 = vector.broadcast %cst_28 : f32 to vector<8x32xf32>
    %73 = arith.subf %72, %70 : vector<8x32xf32>
    %74 = tpu.concatenate %73, %69 in 1 : vector<8x32xf32>, vector<8x32xf32> -> vector<8x64xf32>
    %75 = arith.mulf %74, %27 : vector<8x64xf32>
    %76 = arith.addf %71, %75 : vector<8x64xf32>
    %77 = vector.extract_strided_slice %25 {offsets = [0, 192], sizes = [8, 64], strides = [1, 1]} : vector<8x384xf32> to vector<8x64xf32>
    %78 = vector.extract_strided_slice %77 {offsets = [0, 0], sizes = [8, 32], strides = [1, 1]} : vector<8x64xf32> to vector<8x32xf32>
    %79 = vector.extract_strided_slice %77 {offsets = [0, 32], sizes = [8, 32], strides = [1, 1]} : vector<8x64xf32> to vector<8x32xf32>
    %80 = arith.mulf %77, %26 : vector<8x64xf32>
    %cst_29 = arith.constant 0.000000e+00 : f32
    %81 = vector.broadcast %cst_29 : f32 to vector<8x32xf32>
    %82 = arith.subf %81, %79 : vector<8x32xf32>
    %83 = tpu.concatenate %82, %78 in 1 : vector<8x32xf32>, vector<8x32xf32> -> vector<8x64xf32>
    %84 = arith.mulf %83, %27 : vector<8x64xf32>
    %85 = arith.addf %80, %84 : vector<8x64xf32>
    %86 = vector.extract_strided_slice %25 {offsets = [0, 320], sizes = [8, 64], strides = [1, 1]} : vector<8x384xf32> to vector<8x64xf32>
    %87 = arith.truncf %76 : vector<8x64xf32> to vector<8x64xbf16>
    %88 = arith.truncf %85 : vector<8x64xf32> to vector<8x64xbf16>
    %cst_30 = arith.constant dense<0.000000e+00> : vector<8x8xf32>
    %89 = tpu.matmul %87, %88, %cst_30 {dimension_numbers = #tpu.dot_dimension_numbers<[1], [1], [0], [0], [0, 0, 1, 0], [], []>} : vector<8x64xbf16>, vector<8x64xbf16>, vector<8x8xf32> -> vector<8x8xf32>
    %cst_31 = arith.constant 1.250000e-01 : f32
    %90 = vector.broadcast %cst_31 : f32 to vector<8x8xf32>
    %91 = arith.mulf %89, %90 : vector<8x8xf32>
    %92 = arith.addf %91, %29 : vector<8x8xf32>
    %cst_32 = arith.constant dense<0xFF800000> : vector<8xf32>
    %93 = vector.multi_reduction <maximumf>, %92, %cst_32 [1] : vector<8x8xf32> to vector<8xf32>
    %94 = vector.shape_cast %93 : vector<8xf32> to vector<8x1xf32>
    %95 = vector.broadcast %94 : vector<8x1xf32> to vector<8x8xf32>
    %96 = arith.subf %92, %95 : vector<8x8xf32>
    %97 = math.exp %96 : vector<8x8xf32>
    %cst_33 = arith.constant dense<0.000000e+00> : vector<8xf32>
    %98 = vector.multi_reduction <add>, %97, %cst_33 [1] : vector<8x8xf32> to vector<8xf32>
    %99 = vector.shape_cast %98 : vector<8xf32> to vector<8x1xf32>
    %100 = tpu.reciprocal %99 {approx = true} : vector<8x1xf32> -> vector<8x1xf32>
    %101 = vector.broadcast %100 : vector<8x1xf32> to vector<8x8xf32>
    %102 = arith.mulf %97, %101 : vector<8x8xf32>
    %103 = arith.truncf %102 : vector<8x8xf32> to vector<8x8xbf16>
    %104 = arith.truncf %86 : vector<8x64xf32> to vector<8x64xbf16>
    %cst_34 = arith.constant dense<0.000000e+00> : vector<8x64xf32>
    %105 = tpu.matmul %103, %104, %cst_34 {dimension_numbers = #tpu.dot_dimension_numbers<[1], [0], [0], [1], [0, 0, 1, 1], [], []>} : vector<8x8xbf16>, vector<8x64xbf16>, vector<8x64xf32> -> vector<8x64xf32>
    %106 = tpu.concatenate %67, %105 in 1 : vector<8x64xf32>, vector<8x64xf32> -> vector<8x128xf32>
    %107 = arith.truncf %106 : vector<8x128xf32> to vector<8x128xbf16>
    %c0_35 = arith.constant 0 : index
    %c0_36 = arith.constant 0 : index
    %c0_37 = arith.constant 0 : index
    %108 = vector.load %arg7[%c0_35, %c0_36, %c0_37] : memref<1x128x128xbf16, #tpu.memory_space<vmem>>, vector<1x128x128xbf16>
    %109 = vector.shape_cast %108 : vector<1x128x128xbf16> to vector<128x128xbf16>
    %cst_38 = arith.constant dense<0.000000e+00> : vector<8x128xf32>
    %110 = tpu.matmul %107, %109, %cst_38 {dimension_numbers = #tpu.dot_dimension_numbers<[1], [0], [0], [1], [0, 0, 1, 1], [], []>} : vector<8x128xbf16>, vector<128x128xbf16>, vector<8x128xf32> -> vector<8x128xf32>
    %111 = arith.addf %3, %110 : vector<8x128xf32>
    %c0_39 = arith.constant 0 : index
    %c0_40 = arith.constant 0 : index
    %c0_41 = arith.constant 0 : index
    %112 = vector.load %arg4[%c0_39, %c0_40, %c0_41] : memref<1x1x128xf32, #tpu.memory_space<vmem>>, vector<1x1x128xf32>
    %113 = vector.shape_cast %112 : vector<1x1x128xf32> to vector<1x128xf32>
    %114 = arith.mulf %111, %111 : vector<8x128xf32>
    %cst_42 = arith.constant dense<0.000000e+00> : vector<8xf32>
    %115 = vector.multi_reduction <add>, %114, %cst_42 [1] : vector<8x128xf32> to vector<8xf32>
    %116 = vector.shape_cast %115 : vector<8xf32> to vector<8x1xf32>
    %cst_43 = arith.constant 1.280000e+02 : f32
    %117 = vector.broadcast %cst_43 : f32 to vector<8x1xf32>
    %118 = arith.divf %116, %117 : vector<8x1xf32>
    %cst_44 = arith.constant 9.99999997E-7 : f32
    %119 = vector.broadcast %cst_44 : f32 to vector<8x1xf32>
    %120 = arith.addf %118, %119 : vector<8x1xf32>
    %121 = math.rsqrt %120 : vector<8x1xf32>
    %122 = vector.broadcast %121 : vector<8x1xf32> to vector<8x128xf32>
    %123 = arith.mulf %111, %122 : vector<8x128xf32>
    %124 = vector.broadcast %113 : vector<1x128xf32> to vector<8x128xf32>
    %125 = arith.mulf %123, %124 : vector<8x128xf32>
    %126 = arith.truncf %125 : vector<8x128xf32> to vector<8x128xbf16>
    %c0_45 = arith.constant 0 : index
    %c0_46 = arith.constant 0 : index
    %c0_47 = arith.constant 0 : index
    %127 = vector.load %arg8[%c0_45, %c0_46, %c0_47] : memref<1x128x512xbf16, #tpu.memory_space<vmem>>, vector<1x128x512xbf16>
    %128 = vector.shape_cast %127 : vector<1x128x512xbf16> to vector<128x512xbf16>
    %cst_48 = arith.constant dense<0.000000e+00> : vector<8x512xf32>
    %129 = tpu.matmul %126, %128, %cst_48 {dimension_numbers = #tpu.dot_dimension_numbers<[1], [0], [0], [1], [0, 0, 1, 1], [], []>} : vector<8x128xbf16>, vector<128x512xbf16>, vector<8x512xf32> -> vector<8x512xf32>
    %130 = vector.extract_strided_slice %129 {offsets = [0, 0], sizes = [8, 256], strides = [1, 1]} : vector<8x512xf32> to vector<8x256xf32>
    %131 = vector.extract_strided_slice %129 {offsets = [0, 256], sizes = [8, 256], strides = [1, 1]} : vector<8x512xf32> to vector<8x256xf32>
    %132 = arith.negf %130 : vector<8x256xf32>
    %133 = math.exp %132 : vector<8x256xf32>
    %cst_49 = arith.constant 1.000000e+00 : f32
    %134 = vector.broadcast %cst_49 : f32 to vector<8x256xf32>
    %135 = arith.addf %134, %133 : vector<8x256xf32>
    %136 = arith.divf %134, %135 : vector<8x256xf32>
    %137 = arith.mulf %130, %136 : vector<8x256xf32>
    %138 = arith.mulf %137, %131 : vector<8x256xf32>
    %139 = arith.truncf %138 : vector<8x256xf32> to vector<8x256xbf16>
    %c0_50 = arith.constant 0 : index
    %c0_51 = arith.constant 0 : index
    %c0_52 = arith.constant 0 : index
    %140 = vector.load %arg9[%c0_50, %c0_51, %c0_52] : memref<1x256x128xbf16, #tpu.memory_space<vmem>>, vector<1x256x128xbf16>
    %141 = vector.shape_cast %140 : vector<1x256x128xbf16> to vector<256x128xbf16>
    %cst_53 = arith.constant dense<0.000000e+00> : vector<8x128xf32>
    %142 = tpu.matmul %139, %141, %cst_53 {dimension_numbers = #tpu.dot_dimension_numbers<[1], [0], [0], [1], [0, 0, 1, 1], [], []>} : vector<8x256xbf16>, vector<256x128xbf16>, vector<8x128xf32> -> vector<8x128xf32>
    %143 = arith.addf %111, %142 : vector<8x128xf32>
    %c0_54 = arith.constant 0 : index
    %c0_55 = arith.constant 0 : index
    %144 = vector.load %arg14[%c0_54, %c0_55] : memref<8x128xf32, #tpu.memory_space<vmem>>, vector<8x128xf32>
    tpu.vector_store %arg14[%c0_54, %c0_55], %143 {strides = array<i32>} : memref<8x128xf32, #tpu.memory_space<vmem>>, vector<8x128xf32>,
    %c1_i32 = arith.constant 1 : i32
    %145 = arith.cmpi eq, %arg1, %c1_i32 : i32
    %146 = arith.extui %145 : i1 to i32
    %c0_i32_56 = arith.constant 0 : i32
    %147 = arith.cmpi ne, %146, %c0_i32_56 : i32
    scf.if %147 {
      %c0_57 = arith.constant 0 : index
      %c0_58 = arith.constant 0 : index
      %148 = vector.load %arg13[%c0_57, %c0_58] : memref<8x128xf32, #tpu.memory_space<vmem>>, vector<8x128xf32>
      tpu.vector_store %arg13[%c0_57, %c0_58], %143 {strides = array<i32>} : memref<8x128xf32, #tpu.memory_space<vmem>>, vector<8x128xf32>,
    } else {
    }
    return
  }
  func.func @transform_0(%arg0: i32, %arg1: i32) -> (i32, i32) {
    %c0_i32 = arith.constant 0 : i32
    %c0_i32_0 = arith.constant 0 : i32
    return %arg0, %c0_i32 : i32, i32
  }
  func.func @transform_1(%arg0: i32, %arg1: i32) -> (i32, i32, i32) {
    %c0_i32 = arith.constant 0 : i32
    %c0_i32_0 = arith.constant 0 : i32
    %c0_i32_1 = arith.constant 0 : i32
    return %arg1, %c0_i32, %c0_i32_0 : i32, i32, i32
  }
  func.func @transform_2(%arg0: i32, %arg1: i32) -> (i32, i32, i32) {
    %c0_i32 = arith.constant 0 : i32
    %c0_i32_0 = arith.constant 0 : i32
    %c0_i32_1 = arith.constant 0 : i32
    return %arg1, %c0_i32, %c0_i32_0 : i32, i32, i32
  }
  func.func @transform_3(%arg0: i32, %arg1: i32) -> (i32, i32, i32) {
    %c0_i32 = arith.constant 0 : i32
    %c0_i32_0 = arith.constant 0 : i32
    %c0_i32_1 = arith.constant 0 : i32
    return %arg1, %c0_i32, %c0_i32_0 : i32, i32, i32
  }
  func.func @transform_4(%arg0: i32, %arg1: i32) -> (i32, i32, i32) {
    %c0_i32 = arith.constant 0 : i32
    %c0_i32_0 = arith.constant 0 : i32
    %c0_i32_1 = arith.constant 0 : i32
    return %arg1, %c0_i32, %c0_i32_0 : i32, i32, i32
  }
  func.func @transform_5(%arg0: i32, %arg1: i32) -> (i32, i32, i32) {
    %c0_i32 = arith.constant 0 : i32
    %c0_i32_0 = arith.constant 0 : i32
    %c0_i32_1 = arith.constant 0 : i32
    return %arg1, %c0_i32, %c0_i32_0 : i32, i32, i32
  }
  func.func @transform_6(%arg0: i32, %arg1: i32) -> (i32, i32, i32) {
    %c0_i32 = arith.constant 0 : i32
    %c0_i32_0 = arith.constant 0 : i32
    %c0_i32_1 = arith.constant 0 : i32
    return %arg1, %c0_i32, %c0_i32_0 : i32, i32, i32
  }
  func.func @transform_7(%arg0: i32, %arg1: i32) -> (i32, i32, i32) {
    %c0_i32 = arith.constant 0 : i32
    %c0_i32_0 = arith.constant 0 : i32
    %c0_i32_1 = arith.constant 0 : i32
    return %arg1, %c0_i32, %c0_i32_0 : i32, i32, i32
  }
  func.func @transform_8(%arg0: i32, %arg1: i32) -> (i32, i32) {
    %c0_i32 = arith.constant 0 : i32
    %c0_i32_0 = arith.constant 0 : i32
    %c0_i32_1 = arith.constant 0 : i32
    return %c0_i32, %c0_i32_0 : i32, i32
  }
  func.func @transform_9(%arg0: i32, %arg1: i32) -> (i32, i32) {
    %c0_i32 = arith.constant 0 : i32
    %c0_i32_0 = arith.constant 0 : i32
    %c0_i32_1 = arith.constant 0 : i32
    return %c0_i32, %c0_i32_0 : i32, i32
  }
  func.func @transform_10(%arg0: i32, %arg1: i32) -> (i32, i32, i32) {
    %c0_i32 = arith.constant 0 : i32
    %c0_i32_0 = arith.constant 0 : i32
    %c0_i32_1 = arith.constant 0 : i32
    return %arg0, %c0_i32, %c0_i32_0 : i32, i32, i32
  }
  func.func @transform_11(%arg0: i32, %arg1: i32) -> (i32, i32) {
    %c0_i32 = arith.constant 0 : i32
    %c0_i32_0 = arith.constant 0 : i32
    return %arg0, %c0_i32 : i32, i32
  }
}

module attributes {stable_mosaic.version = 11 : i64} {
  func.func @_head_loss_kernel(%arg0: i32, %arg1: memref<16x128xf32, #tpu.memory_space<vmem>>, %arg2: memref<1x128xf32, #tpu.memory_space<vmem>>, %arg3: memref<128x256xbf16, #tpu.memory_space<vmem>>, %arg4: memref<16x1xi32, #tpu.memory_space<vmem>>, %arg5: memref<16x256xf32, #tpu.memory_space<vmem>>, %arg6: memref<1x128xf32, #tpu.memory_space<vmem>>) attributes {dimension_semantics = [#tpu.dimension_semantics<arbitrary>], iteration_bounds = array<i64: 1>, scalar_prefetch = 0 : i64, scratch_operands = 0 : i64, tpu.core_type = #tpu.core_type<tc>, window_params = [{pipeline_mode = #tpu.pipeline_mode<synchronous>, transform_indices = @transform_0, window_bounds = array<i64: 16, 128>}, {pipeline_mode = #tpu.pipeline_mode<synchronous>, transform_indices = @transform_1, window_bounds = array<i64: 1, 128>}, {pipeline_mode = #tpu.pipeline_mode<synchronous>, transform_indices = @transform_2, window_bounds = array<i64: 128, 256>}, {pipeline_mode = #tpu.pipeline_mode<synchronous>, transform_indices = @transform_3, window_bounds = array<i64: 16, 1>}, {pipeline_mode = #tpu.pipeline_mode<synchronous>, transform_indices = @transform_4, window_bounds = array<i64: 16, 256>}, {pipeline_mode = #tpu.pipeline_mode<synchronous>, transform_indices = @transform_5, window_bounds = array<i64: 1, 128>}]} {
    %c0 = arith.constant 0 : index
    %c0_0 = arith.constant 0 : index
    %0 = vector.load %arg1[%c0, %c0_0] : memref<16x128xf32, #tpu.memory_space<vmem>>, vector<16x128xf32>
    %c0_1 = arith.constant 0 : index
    %c0_2 = arith.constant 0 : index
    %1 = vector.load %arg2[%c0_1, %c0_2] : memref<1x128xf32, #tpu.memory_space<vmem>>, vector<1x128xf32>
    %2 = arith.mulf %0, %0 : vector<16x128xf32>
    %cst = arith.constant dense<0.000000e+00> : vector<16xf32>
    %3 = vector.multi_reduction <add>, %2, %cst [1] : vector<16x128xf32> to vector<16xf32>
    %4 = vector.shape_cast %3 : vector<16xf32> to vector<16x1xf32>
    %cst_3 = arith.constant 1.280000e+02 : f32
    %5 = vector.broadcast %cst_3 : f32 to vector<16x1xf32>
    %6 = arith.divf %4, %5 : vector<16x1xf32>
    %cst_4 = arith.constant 9.99999997E-7 : f32
    %7 = vector.broadcast %cst_4 : f32 to vector<16x1xf32>
    %8 = arith.addf %6, %7 : vector<16x1xf32>
    %9 = math.rsqrt %8 : vector<16x1xf32>
    %10 = vector.broadcast %9 : vector<16x1xf32> to vector<16x128xf32>
    %11 = arith.mulf %0, %10 : vector<16x128xf32>
    %12 = vector.broadcast %1 : vector<1x128xf32> to vector<16x128xf32>
    %13 = arith.mulf %11, %12 : vector<16x128xf32>
    %14 = arith.truncf %13 : vector<16x128xf32> to vector<16x128xbf16>
    %c0_5 = arith.constant 0 : index
    %c0_6 = arith.constant 0 : index
    %15 = vector.load %arg3[%c0_5, %c0_6] : memref<128x256xbf16, #tpu.memory_space<vmem>>, vector<128x256xbf16>
    %cst_7 = arith.constant dense<0.000000e+00> : vector<16x256xf32>
    %16 = tpu.matmul %14, %15, %cst_7 {dimension_numbers = #tpu.dot_dimension_numbers<[1], [0], [0], [1], [0, 0, 1, 1], [], []>} : vector<16x128xbf16>, vector<128x256xbf16>, vector<16x256xf32> -> vector<16x256xf32>
    %c0_8 = arith.constant 0 : index
    %c0_9 = arith.constant 0 : index
    %17 = vector.load %arg5[%c0_8, %c0_9] : memref<16x256xf32, #tpu.memory_space<vmem>>, vector<16x256xf32>
    tpu.vector_store %arg5[%c0_8, %c0_9], %16 {strides = array<i32>} : memref<16x256xf32, #tpu.memory_space<vmem>>, vector<16x256xf32>,
    %c0_10 = arith.constant 0 : index
    %c0_11 = arith.constant 0 : index
    %18 = vector.load %arg4[%c0_10, %c0_11] : memref<16x1xi32, #tpu.memory_space<vmem>>, vector<16x1xi32>
    %cst_12 = arith.constant dense<0xFF800000> : vector<16xf32>
    %19 = vector.multi_reduction <maximumf>, %16, %cst_12 [1] : vector<16x256xf32> to vector<16xf32>
    %20 = vector.shape_cast %19 : vector<16xf32> to vector<16x1xf32>
    %21 = vector.broadcast %20 : vector<16x1xf32> to vector<16x256xf32>
    %22 = arith.subf %16, %21 : vector<16x256xf32>
    %23 = math.exp %22 : vector<16x256xf32>
    %cst_13 = arith.constant dense<0.000000e+00> : vector<16xf32>
    %24 = vector.multi_reduction <add>, %23, %cst_13 [1] : vector<16x256xf32> to vector<16xf32>
    %25 = vector.shape_cast %24 : vector<16xf32> to vector<16x1xf32>
    %26 = math.log %25 : vector<16x1xf32>
    %27 = arith.addf %26, %20 : vector<16x1xf32>
    %28 = tpu.iota {dimensions = array<i32: 1>} : vector<16x256xi32>
    %29 = vector.broadcast %18 : vector<16x1xi32> to vector<16x256xi32>
    %30 = arith.cmpi eq, %28, %29 : vector<16x256xi32>
    %cst_14 = arith.constant 0.000000e+00 : f32
    %31 = vector.broadcast %cst_14 : f32 to vector<16x256xf32>
    %32 = arith.select %30, %16, %31 : vector<16x256xi1>, vector<16x256xf32>
    %cst_15 = arith.constant dense<0.000000e+00> : vector<16xf32>
    %33 = vector.multi_reduction <add>, %32, %cst_15 [1] : vector<16x256xf32> to vector<16xf32>
    %34 = vector.shape_cast %33 : vector<16xf32> to vector<16x1xf32>
    %c-100_i32 = arith.constant -100 : i32
    %35 = vector.broadcast %c-100_i32 : i32 to vector<16x1xi32>
    %36 = arith.cmpi ne, %18, %35 : vector<16x1xi32>
    %37 = arith.extui %36 : vector<16x1xi1> to vector<16x1xi32>
    %38 = arith.sitofp %37 : vector<16x1xi32> to vector<16x1xf32>
    %39 = arith.subf %27, %34 : vector<16x1xf32>
    %40 = arith.mulf %39, %38 : vector<16x1xf32>
    %41 = vector.shape_cast %40 : vector<16x1xf32> to vector<1x16x1xf32>
    %cst_16 = arith.constant dense<0.000000e+00> : vector<1xf32>
    %42 = vector.multi_reduction <add>, %41, %cst_16 [1, 2] : vector<1x16x1xf32> to vector<1xf32>
    %43 = vector.shape_cast %42 : vector<1xf32> to vector<1x1x1xf32>
    %44 = vector.extract %43[0, 0, 0] : f32 from vector<1x1x1xf32>
    %45 = vector.shape_cast %38 : vector<16x1xf32> to vector<1x16x1xf32>
    %cst_17 = arith.constant dense<0.000000e+00> : vector<1xf32>
    %46 = vector.multi_reduction <add>, %45, %cst_17 [1, 2] : vector<1x16x1xf32> to vector<1xf32>
    %47 = vector.shape_cast %46 : vector<1xf32> to vector<1x1x1xf32>
    %48 = vector.extract %47[0, 0, 0] : f32 from vector<1x1x1xf32>
    %49 = tpu.iota {dimensions = array<i32: 1>} : vector<1x128xi32>
    %c0_i32 = arith.constant 0 : i32
    %50 = vector.broadcast %c0_i32 : i32 to vector<1x128xi32>
    %51 = arith.cmpi eq, %49, %50 : vector<1x128xi32>
    %cst_18 = arith.constant 0.000000e+00 : f32
    %52 = vector.broadcast %44 : f32 to vector<1x128xf32>
    %53 = vector.broadcast %cst_18 : f32 to vector<1x128xf32>
    %54 = arith.select %51, %52, %53 : vector<1x128xi1>, vector<1x128xf32>
    %c1_i32 = arith.constant 1 : i32
    %55 = vector.broadcast %c1_i32 : i32 to vector<1x128xi32>
    %56 = arith.cmpi eq, %49, %55 : vector<1x128xi32>
    %cst_19 = arith.constant 0.000000e+00 : f32
    %57 = vector.broadcast %48 : f32 to vector<1x128xf32>
    %58 = vector.broadcast %cst_19 : f32 to vector<1x128xf32>
    %59 = arith.select %56, %57, %58 : vector<1x128xi1>, vector<1x128xf32>
    %60 = arith.addf %54, %59 : vector<1x128xf32>
    %c0_20 = arith.constant 0 : index
    %c0_21 = arith.constant 0 : index
    %61 = vector.load %arg6[%c0_20, %c0_21] : memref<1x128xf32, #tpu.memory_space<vmem>>, vector<1x128xf32>
    tpu.vector_store %arg6[%c0_20, %c0_21], %60 {strides = array<i32>} : memref<1x128xf32, #tpu.memory_space<vmem>>, vector<1x128xf32>,
    return
  }
  func.func @transform_0(%arg0: i32) -> (i32, i32) {
    %c0_i32 = arith.constant 0 : i32
    %c0_i32_0 = arith.constant 0 : i32
    %c0_i32_1 = arith.constant 0 : i32
    return %c0_i32, %c0_i32_0 : i32, i32
  }
  func.func @transform_1(%arg0: i32) -> (i32, i32) {
    %c0_i32 = arith.constant 0 : i32
    %c0_i32_0 = arith.constant 0 : i32
    %c0_i32_1 = arith.constant 0 : i32
    return %c0_i32, %c0_i32_0 : i32, i32
  }
  func.func @transform_2(%arg0: i32) -> (i32, i32) {
    %c0_i32 = arith.constant 0 : i32
    %c0_i32_0 = arith.constant 0 : i32
    %c0_i32_1 = arith.constant 0 : i32
    return %c0_i32, %c0_i32_0 : i32, i32
  }
  func.func @transform_3(%arg0: i32) -> (i32, i32) {
    %c0_i32 = arith.constant 0 : i32
    %c0_i32_0 = arith.constant 0 : i32
    %c0_i32_1 = arith.constant 0 : i32
    return %c0_i32, %c0_i32_0 : i32, i32
  }
  func.func @transform_4(%arg0: i32) -> (i32, i32) {
    %c0_i32 = arith.constant 0 : i32
    %c0_i32_0 = arith.constant 0 : i32
    %c0_i32_1 = arith.constant 0 : i32
    return %c0_i32, %c0_i32_0 : i32, i32
  }
  func.func @transform_5(%arg0: i32) -> (i32, i32) {
    %c0_i32 = arith.constant 0 : i32
    %c0_i32_0 = arith.constant 0 : i32
    %c0_i32_1 = arith.constant 0 : i32
    return %c0_i32, %c0_i32_0 : i32, i32
  }
}

</mosaic_0001>

<bundles_post_ra>
// kernel: checkpointed_model_forward.3
= control target key start
LH: loop header
LB: loop body
LE: loop exit
PB: predicated region body
PF: predicated region fallthrough
CT: control target
= control target key end

     0   :  { %11 = vsyncpa [#allocation3], 0  ;;  %s593_s0 = inlined_call_operand.vmem [shape: f32[16,128], index: 0, kind: input, shape index: {}]   ;;  %s594_s1 = inlined_call_operand.vmem [shape: f32[1,128], index: 1, kind: input, shape index: {}]   ;;  %s595_s2 = inlined_call_operand.hbm [shape: bf16[128,256], index: 2, kind: input, shape index: {}]   ;;  %s596_s3 = inlined_call_operand.vmem [shape: s32[16,1], index: 3, kind: input, shape index: {}]   ;;  %s597_s4 = inlined_call_operand.hbm [shape: f32[16,256], index: 4, kind: output, shape index: {0}]   ;;  %s598_s5 = inlined_call_operand.vmem [shape: f32[1,128], index: 5, kind: output, shape index: {1}]  }
   0x1   :  { %12 = vsyncpa [#allocation4], 0  ;;  %s21_s20 = sshll.u32 %s595_s2, 4  ;;  %s501_s21 = smov [#allocation2]   ;;  %s22_s20 = int_to_ptr.hbm [resolvable:$true] %s21_s20 }
   0x2   :  { %s23_s22 = sshll.u32 %s501_s21, 4  ;;  %s502_s23 = smov 128   ;;  %s24_s22 = int_to_ptr.vmem [resolvable:$true] %s23_s22 }
   0x3   :  { %s503_s24 = smov 8  }
   0x4   :  { %29 = dma.hbm_to_vmem [thread:$0]  %s22_s20, 2048, %s24_s22, [#allocation3], %s502_s23, %s502_s23, %s503_s24  }
   0x5   :  { %497 = dma.done.wait [#allocation3], 2048  }
   0x6   :  { %498 = vsyncadd [#allocation3], 4294965248  ;;  %v546_v0 = vld [vmem:[%s593_s0] sm:$0xff]  ;;  %v553_v2 = vld [vmem:[%s593_s0 + $0x8] sm:$0xff]  ;;  %v504_v9 = vmov 128.0   ;;  %v505_v63 = vmov 0  }
   0x7   :  { %v39_v1 = vmul.f32 %v546_v0, %v546_v0  ;;  %v40_v3 = vmul.f32 %v553_v2, %v553_v2  ;;  %v391_v4 = vld [vmem:[#allocation2 + $0x70] sm:$0xf]  ;;  %v414_v5 = vld [vmem:[#allocation2 + $0x74] sm:$0xf0]  ;;  %v413_v6 = vld [vmem:[#allocation2 + $0x74] sm:$0xf]  ;;  %431 = vrcp.f32 %v504_v9  ;;  %428 = vset.pattern.permute.xlu2 %v505_v63  ;;  %429 = vset.pattern.permute.xlu0 %v505_v63 }
   0x8   :  { %v392_v7 = vor.u32 %v414_v5, %v391_v4  ;;  %v393_v8 = vld [vmem:[#allocation2 + $0x78] sm:$0xf0]  ;;  %v383_v11 = vld [vmem:[#allocation2 + $0x60] sm:$0xf]  ;;  %v412_v12 = vld [vmem:[#allocation2 + $0x64] sm:$0xf0] }
   0x9   :  { %41 = vadd.xlane.f32.xlu0 %v39_v1  ;;  %v396_v10 = vor.u32 %v413_v6, %v393_v8  ;;  %v411_v13 = vld [vmem:[#allocation2 + $0x64] sm:$0xf]  ;;  %v384_v14 = vor.u32 %v412_v12, %v383_v11  ;;  %v385_v15 = vld [vmem:[#allocation2 + $0x68] sm:$0xf0]  ;;  %v375_v18 = vld [vmem:[#allocation2 + $0x50] sm:$0xf] }
   0xa   :  { %180 = vmatpush.bf16.msra.mxu0 %v392_v7  ;;  %v388_v16 = vor.u32 %v411_v13, %v385_v15  ;;  %v410_v19 = vld [vmem:[#allocation2 + $0x54] sm:$0xf0]  ;;  %v409_v20 = vld [vmem:[#allocation2 + $0x54] sm:$0xf]  ;;  %v377_v22 = vld [vmem:[#allocation2 + $0x58] sm:$0xf0] }
   0xb   :  { %194 = vmatpush.bf16.msra.mxu1 %v396_v10  ;;  %v376_v21 = vor.u32 %v410_v19, %v375_v18  ;;  %v380_v23 = vor.u32 %v409_v20, %v377_v22  ;;  %v367_v25 = vld [vmem:[#allocation2 + $0x40] sm:$0xf]  ;;  %v408_v26 = vld [vmem:[#allocation2 + $0x44] sm:$0xf0]  ;;  %v407_v27 = vld [vmem:[#allocation2 + $0x44] sm:$0xf] }
   0xc   :  { %v368_v28 = vor.u32 %v408_v26, %v367_v25  ;;  %v369_v29 = vld [vmem:[#allocation2 + $0x48] sm:$0xf0]  ;;  %v359_v32 = vld [vmem:[#allocation2 + $0x30] sm:$0xf]  ;;  %v406_v33 = vld [vmem:[#allocation2 + $0x34] sm:$0xf0]  ;;  %v244_v26 = vlaneseq }
   0xd   :  { %v432_v17 = vpop.eup %431  ;;  %v372_v30 = vor.u32 %v407_v27, %v369_v29  ;;  %v405_v34 = vld [vmem:[#allocation2 + $0x34] sm:$0xf]  ;;  %v360_v35 = vor.u32 %v406_v33, %v359_v32  ;;  %v361_v36 = vld [vmem:[#allocation2 + $0x38] sm:$0xf0]  ;;  %v351_v39 = vld [vmem:[#allocation2 + $0x20] sm:$0xf] }
   0xe   :  { %181 = vmatpush.bf16.msra.mxu0 %v384_v14  ;;  %v46_v24 = vmul.f32 128.0, %v432_v17  ;;  %v364_v37 = vor.u32 %v405_v34, %v361_v36  ;;  %v404_v40 = vld [vmem:[#allocation2 + $0x24] sm:$0xf0]  ;;  %v403_v41 = vld [vmem:[#allocation2 + $0x24] sm:$0xf]  ;;  %vm50_vm0 = vweird.f32 %v432_v17  ;;  %v574_v27 = vand.u32 127, %v244_v26 }
   0xf   :  { %195 = vmatpush.bf16.msra.mxu1 %v388_v16  ;;  %v352_v42 = vor.u32 %v404_v40, %v351_v39  ;;  %v353_v43 = vld [vmem:[#allocation2 + $0x28] sm:$0xf0]  ;;  %v343_v46 = vld [vmem:[#allocation2 + $0x10] sm:$0xf]  ;;  %v402_v47 = vld [vmem:[#allocation2 + $0x14] sm:$0xf0] }
  0x10   :  { %v47_v31 = vsub.f32 1.0, %v46_v24  ;;  %v356_v44 = vor.u32 %v403_v41, %v353_v43  ;;  %v401_v48 = vld [vmem:[#allocation2 + $0x14] sm:$0xf]  ;;  %v344_v49 = vor.u32 %v402_v47, %v343_v46  ;;  %v345_v50 = vld [vmem:[#allocation2 + $0x18] sm:$0xf0]  ;;  %v560_v62 = vld [vmem:[%s596_s3] sm:$0xff] }
  0x11   :  { %43 = vadd.xlane.f32.xlu0 %v40_v3  ;;  %v335_v51 = vld [vmem:[#allocation2] sm:$0xf]  ;;  %v400_v52 = vld [vmem:[#allocation2 + $0x4] sm:$0xf0]  ;;  %v348_v53 = vor.u32 %v401_v48, %v345_v50  ;;  %v399_v54 = vld [vmem:[#allocation2 + $0x4] sm:$0xf]  ;;  %248 = vperm.xlu2 %428, %v560_v62  }
  0x12   :  { %182 = vmatpush.bf16.msra.mxu0 %v376_v21  ;;  %v48_v38 = vmul.f32 %v432_v17, %v47_v31  ;;  %v337_v55 = vld [vmem:[#allocation2 + $0x8] sm:$0xf0]  ;;  %v336_v57 = vor.u32 %v400_v52, %v335_v51  ;;  %v430_v20 = vld [vmem:[%s594_s1] ss:$0 sm:$0xff]  ;;  %vm267_vm11 = vcmp.ne.s32.totalorder %v560_v62, 4294967196  ;;  %vm277_vm13 = vcmask 7168  }
  0x13   :  { %196 = vmatpush.bf16.msra.mxu1 %v380_v23  ;;  %v340_v58 = vor.u32 %v399_v54, %v337_v55  ;;  %v566_v7 = vld [vmem:[%s596_s3 + $0x8] sm:$0xff]  ;;  %s507_s1 = smov [#allocation5]   ;;  %s316_s10 = sshll.u32 %s597_s4, 4  ;;  %vm302_vm14 = vcmp.eq.s32.totalorder %v574_v27, 0  ;;  %vm305_vm15 = vcmp.eq.s32.totalorder %v574_v27, 1  ;;  %s317_s10 = int_to_ptr.hbm [resolvable:$true] %s316_s10 }
  0x14   :  { %v49_v45 = vadd.f32 %v432_v17, %v48_v38  ;;  %vm268_vm12 = vcmp.ne.s32.totalorder %v566_v7, 4294967196  ;;  %s314_s7 = sshll.u32 %s507_s1, 4  ;;  %s508_s11 = smov 256   ;;  %s315_s7 = int_to_ptr.vmem [resolvable:$true] %s314_s7 }
  0x15   :  { %s509_s12 = smov 16  }
  0x16   :  { %183 = vmatpush.bf16.msra.mxu0 %v368_v28  ;;  %v51_v56 = vsel %vm50_vm0, %v432_v17, %v49_v45  ;;  %v246_v28 = vadd.s32 128, %v574_v27 }
  0x17   :  { %197 = vmatpush.bf16.msra.mxu1 %v372_v30 }
  0x19   :  { %251 = vperm.xlu2 %428, %v566_v7  }
  0x1a   :  { %184 = vmatpush.bf16.msra.mxu0 %v360_v35 }
  0x1b   :  { %198 = vmatpush.bf16.msra.mxu1 %v364_v37 }
  0x1e   :  { %185 = vmatpush.bf16.msra.mxu0 %v352_v42 }
  0x1f   :  { %199 = vmatpush.bf16.msra.mxu1 %v356_v44 }
  0x22   :  { %186 = vmatpush.bf16.msra.mxu0 %v344_v49 }
  0x23   :  { %200 = vmatpush.bf16.msra.mxu1 %v348_v53 }
  0x26   :  { %187 = vmatpush.bf16.msra.mxu0 %v336_v57  ;;  %v506_v57 = vmov 0.0  }
  0x27   :  { %201 = vmatpush.bf16.msra.mxu1 %v340_v58  ;;  %v397_v58 = vsel %vm267_vm11, 1.0, %v506_v57 }
  0x6b   :  { %v249_v29 = vpop.permute.xlu2 %248 }
  0x6c   :  { %vm253_vm7 = vcmp.eq.s32.totalorder %v574_v27, %v249_v29  ;;  %vm254_vm8 = vcmp.eq.s32.totalorder %v246_v28, %v249_v29 }
  0x73   :  { %v252_v49 = vpop.permute.xlu2 %251 }
  0x74   :  { %vm255_vm9 = vcmp.eq.s32.totalorder %v574_v27, %v252_v49  ;;  %vm256_vm10 = vcmp.eq.s32.totalorder %v246_v28, %v252_v49 }
  0x7c   :  { %v42_v59 = vpop.xlane.xlu0 %41 }
  0x7d   :  { %v52_v60 = vmul.f32 %v51_v56, %v42_v59  ;;  %v398_v59 = vsel %vm268_vm12, 1.0, %v506_v57 }
  0x7f   :  { %v54_v61 = vadd.f32 1e-06, %v52_v60  ;;  %v290_v60 = vsel %vm277_vm13, %v397_v58, 0.0 }
  0x81   :  { %433 = vrsqrt.f32 %v54_v61  ;;  %vm62_vm2 = vweird.f32 %v54_v61 }
  0x84   :  { %v44_v1 = vpop.xlane.xlu0 %43 }
  0x85   :  { %v53_v3 = vmul.f32 %v51_v56, %v44_v1 }
  0x87   :  { %v434_v4 = vpop.eup %433  ;;  %v55_v5 = vadd.f32 1e-06, %v53_v3 }
  0x88   :  { %v57_v6 = vmul.f32 %v434_v4, %v54_v61  ;;  %vm63_vm1 = vweird.f32 %v434_v4  ;;  %v291_v61 = vsel %vm277_vm13, %v398_v59, 0.0 }
  0x89   :  { %435 = vrsqrt.f32 %v55_v5  ;;  %vm64_vm3 = vmor %vm62_vm2, %vm63_vm1  ;;  %vm72_vm5 = vweird.f32 %v55_v5  ;;  %v292_v63 = vadd.f32 %v291_v61, %v290_v60 }
  0x8a   :  { %v58_v8 = vmul.f32 %v434_v4, %v57_v6 }
  0x8c   :  { %v59_v9 = vmul.f32 0.5, %v58_v8 }
  0x8e   :  { %v60_v10 = vsub.f32 1.5, %v59_v9 }
  0x8f   :  { %v436_v11 = vpop.eup %435 }
  0x90   :  { %v67_v12 = vmul.f32 %v436_v11, %v55_v5  ;;  %v61_v13 = vmul.f32 %v434_v4, %v60_v10  ;;  %vm73_vm4 = vweird.f32 %v436_v11 }
  0x91   :  { %vm74_vm6 = vmor %vm72_vm5, %vm73_vm4 }
  0x92   :  { %v68_v14 = vmul.f32 %v436_v11, %v67_v12  ;;  %v65_v17 = vsel %vm64_vm3, %v434_v4, %v61_v13 }
  0x93   :  { %v76_v19 = vmul.f32 %v65_v17, %v546_v0 }
  0x94   :  { %v69_v15 = vmul.f32 0.5, %v68_v14 }
  0x95   :  { %v81_v23 = vmul.f32 %v430_v20, %v76_v19 }
  0x96   :  { %v70_v16 = vsub.f32 1.5, %v69_v15 }
  0x98   :  { %v71_v18 = vmul.f32 %v436_v11, %v70_v16 }
  0x9a   :  { %v75_v21 = vsel %vm74_vm6, %v436_v11, %v71_v18 }
  0x9b   :  { %v77_v22 = vmul.f32 %v75_v21, %v553_v2 }
  0x9d   :  { %v82_v24 = vmul.f32 %v430_v20, %v77_v22 }
  0x9f   :  { %v83_v25 = vpack.c.bf16 %v82_v24, %v81_v23 }
  0xa1   :  { %188 = vmatmul.bf16.vlgmr.msra.gmra.mxu0 %v83_v25  ;;  %202 = vmatmul.bf16.vlgmr.msra.gmra.mxu1 %v83_v25 }
 0x11e   :  { %v189_v0 = vpop.f32.mrf.mxu0  ;;  %v203_v30 = vpop.f32.mrf.mxu1 }
 0x11f   :  { %208 = vst [vmem:[#allocation5] sm:$0xff] %v189_v0  ;;  %v214_v31 = vmax.f32 %v189_v0, %v203_v30  ;;  %v257_v32 = vsel %vm253_vm7, %v189_v0, 0.0  ;;  %v258_v2 = vsel %vm254_vm8, %v203_v30, 0.0 }
 0x120   :  { %209 = vst [vmem:[#allocation5 + $0x8] sm:$0xff] %v203_v30  ;;  %v261_v33 = vadd.f32 %v258_v2, %v257_v32 }
 0x121   :  { %215 = vmax.xlane.f32.xlu1 %v214_v31 }
 0x122   :  { %262 = vadd.xlane.f32.xlu2 %v261_v33 }
 0x126   :  { %v191_v34 = vpop.f32.mrf.mxu0  ;;  %v205_v35 = vpop.f32.mrf.mxu1 }
 0x127   :  { %210 = vst [vmem:[#allocation5 + $0x10] sm:$0xff] %v191_v34  ;;  %v217_v36 = vmax.f32 %v191_v34, %v205_v35  ;;  %v259_v51 = vsel %vm255_vm9, %v191_v34, 0.0  ;;  %v260_v52 = vsel %vm256_vm10, %v205_v35, 0.0 }
 0x128   :  { %211 = vst [vmem:[#allocation5 + $0x18] sm:$0xff] %v205_v35  ;;  %v264_v55 = vadd.f32 %v260_v52, %v259_v51 }
 0x129   :  { %218 = vmax.xlane.f32.xlu1 %v217_v36  ;;  %322 = dma.vmem_to_hbm [thread:$0]  %s315_s7, 512, %s317_s10, [#allocation4], %s508_s11, %s508_s11, %s509_s12  }
 0x194   :  { %v216_v37 = vpop.xlane.xlu1 %215 }
 0x195   :  { %v220_v38 = vsub.f32 %v189_v0, %v216_v37  ;;  %v221_v39 = vsub.f32 %v203_v30, %v216_v37  ;;  %v263_v8 = vpop.xlane.xlu2 %262 }
 0x197   :  { %v224_v40 = vmul.f32 1.442695, %v220_v38  ;;  %v226_v41 = vmul.f32 1.442695, %v221_v39 }
 0x199   :  { %437 = vpow2.f32 %v224_v40 }
 0x19a   :  { %439 = vpow2.f32 %v226_v41 }
 0x19c   :  { %v219_v42 = vpop.xlane.xlu1 %218 }
 0x19d   :  { %v222_v43 = vsub.f32 %v191_v34, %v219_v42  ;;  %v223_v44 = vsub.f32 %v205_v35, %v219_v42 }
 0x19f   :  { %v438_v45 = vpop.eup %437  ;;  %v228_v46 = vmul.f32 1.442695, %v222_v43  ;;  %v230_v47 = vmul.f32 1.442695, %v223_v44 }
 0x1a0   :  { %v440_v48 = vpop.eup %439 }
 0x1a1   :  { %441 = vpow2.f32 %v228_v46  ;;  %v232_v50 = vadd.f32 %v440_v48, %v438_v45 }
 0x1a2   :  { %443 = vpow2.f32 %v230_v47 }
 0x1a3   :  { %233 = vadd.xlane.f32.xlu0 %v232_v50 }
 0x1a7   :  { %v442_v53 = vpop.eup %441 }
 0x1a8   :  { %v444_v54 = vpop.eup %443 }
 0x1a9   :  { %v235_v56 = vadd.f32 %v444_v54, %v442_v53 }
 0x1ab   :  { %265 = vadd.xlane.f32.xlu0 %v264_v55  ;;  %236 = vadd.xlane.f32.xlu1 %v235_v56 }
 0x1b3   :  { %293 = vadd.xlane.f32.xlu0 %v292_v63 }
 0x216   :  { %v234_v1 = vpop.xlane.xlu0 %233 }
 0x217   :  { %445 = vlog2.f32 %v234_v1 }
 0x21d   :  { %v446_v3 = vpop.eup %445 }
 0x21e   :  { %v239_v4 = vmul.f32 0.6931472, %v446_v3  ;;  %v237_v5 = vpop.xlane.xlu1 %236  ;;  %v266_v11 = vpop.xlane.xlu0 %265 }
 0x21f   :  { %447 = vlog2.f32 %v237_v5 }
 0x220   :  { %v242_v6 = vadd.f32 %v239_v4, %v216_v37 }
 0x222   :  { %v273_v7 = vsub.f32 %v242_v6, %v263_v8 }
 0x224   :  { %v275_v13 = vmul.f32 %v397_v58, %v273_v7 }
 0x225   :  { %v448_v62 = vpop.eup %447 }
 0x226   :  { %v241_v9 = vmul.f32 0.6931472, %v448_v62  ;;  %v278_v15 = vsel %vm277_vm13, %v275_v13, 0.0  ;;  %v294_v18 = vpop.xlane.xlu0 %293 }
 0x227   :  { %v295_v19 = vrot.slane %v294_v18, 4 }
 0x228   :  { %v243_v10 = vadd.f32 %v241_v9, %v219_v42 }
 0x229   :  { %v296_v20 = vadd.f32 %v295_v19, %v294_v18 }
 0x22a   :  { %v274_v12 = vsub.f32 %v243_v10, %v266_v11 }
 0x22b   :  { %v297_v21 = vrot.slane %v296_v20, 2 }
 0x22c   :  { %v276_v14 = vmul.f32 %v398_v59, %v274_v12 }
 0x22d   :  { %v298_v25 = vadd.f32 %v297_v21, %v296_v20 }
 0x22e   :  { %v279_v16 = vsel %vm277_vm13, %v276_v14, 0.0 }
 0x22f   :  { %v280_v17 = vadd.f32 %v279_v16, %v278_v15  ;;  %v299_v29 = vrot.slane %v298_v25, 1 }
 0x231   :  { %281 = vadd.xlane.f32.xlu1 %v280_v17  ;;  %v300_v31 = vadd.f32 %v299_v29, %v298_v25 }
 0x2a4   :  { %v282_v22 = vpop.xlane.xlu1 %281 }
 0x2a5   :  { %v283_v23 = vrot.slane %v282_v22, 4 }
 0x2a7   :  { %v284_v24 = vadd.f32 %v283_v23, %v282_v22 }
 0x2a9   :  { %v285_v26 = vrot.slane %v284_v24, 2 }
 0x2ab   :  { %v286_v28 = vadd.f32 %v285_v26, %v284_v24 }
 0x2ad   :  { %v287_v0 = vrot.slane %v286_v28, 1 }
 0x2af   :  { %v288_v30 = vadd.f32 %v287_v0, %v286_v28 }
 0x2b1   :  { %415 = vpush %v288_v30 }
 0x2b2   :  { %417 = vpush %v300_v31 }
 0x2e2   :  { %s416_s4 = spop %415 }
 0x2e3   :  { %v303_v32 = vstv %s416_s4  ;;  %s418_s13 = spop %417 }
 0x2e4   :  { %v304_v2 = vsel %vm302_vm14, %v303_v32, 0.0  ;;  %v306_v33 = vstv %s418_s13 }
 0x2e5   :  { %v307_v34 = vsel %vm305_vm15, %v306_v33, 0.0 }
 0x2e6   :  { %v308_v35 = vadd.f32 %v307_v34, %v304_v2 }
 0x2e8   :  { %309 = vst [vmem:[%s598_s5] sm:$0x1] %v308_v35 }
 0x2e9   :  { %499 = dma.done.wait [#allocation4], 512  }
 0x2ea   :  { %500 = vsyncadd [#allocation4], 4294966784 }
 0x2eb   :  { %331 = vsyncpa [#allocation3], 1 }
 0x2ec   :  { %332 = vsyncpa [#allocation4], 1 }

// kernel: checkpointed_model_forward.2
= control target key start
LH: loop header
LB: loop body
LE: loop exit
PB: predicated region body
PF: predicated region fallthrough
CT: control target
= control target key end

     0   :  { %s2951_s0 = inlined_call_operand.vmem [shape: f32[16,128], index: 0, kind: input, shape index: {}]   ;;  %s2952_s1 = inlined_call_operand.vmem [shape: f32[2,1,128], index: 1, kind: input, shape index: {}]   ;;  %s2953_s2 = inlined_call_operand.vmem [shape: f32[2,1,128], index: 2, kind: input, shape index: {}]   ;;  %s2954_s3 = inlined_call_operand.hbm [shape: bf16[2,128,384], index: 3, kind: input, shape index: {}]   ;;  %s2955_s4 = inlined_call_operand.vmem [shape: f32[2,1,384], index: 4, kind: input, shape index: {}]   ;;  %s2956_s5 = inlined_call_operand.vmem [shape: bf16[2,128,128], index: 5, kind: input, shape index: {}]   ;;  %s2957_s6 = inlined_call_operand.hbm [shape: bf16[2,128,512], index: 6, kind: input, shape index: {}]   ;;  %s2958_s7 = inlined_call_operand.hbm [shape: bf16[2,256,128], index: 7, kind: input, shape index: {}]   ;;  %s2959_s8 = inlined_call_operand.vmem [shape: f32[8,64], index: 8, kind: input, shape index: {}]   ;;  %s2960_s9 = inlined_call_operand.vmem [shape: f32[8,64], index: 9, kind: input, shape index: {}]   ;;  %s2961_s10 = inlined_call_operand.vmem [shape: f32[2,8,8], index: 10, kind: input, shape index: {}]   ;;  %s2962_s11 = inlined_call_operand.vmem [shape: f32[16,128], index: 11, kind: output, shape index: {}]  }
   0x1   :  { %2967 = sst [smem:[#allocation15_spill]] %s2951_s0 }
   0x2   :  { %2968 = sst [smem:[#allocation16_spill]] %s2954_s3 }
   0x3   :  { %2969 = sst [smem:[#allocation17_spill]] %s2955_s4 }
   0x4   :  { %2970 = sst [smem:[#allocation18_spill]] %s2956_s5 }
   0x5   :  { %2971 = sst [smem:[#allocation19_spill]] %s2957_s6 }
   0x6   :  { %2972 = sst [smem:[#allocation20_spill]] %s2958_s7 }
   0x7   :  { %2973 = sst [smem:[#allocation21_spill]] %s2959_s8 }
   0x8   :  { %2974 = sst [smem:[#allocation22_spill]] %s2960_s9 }
   0x9   :  { %2975 = sst [smem:[#allocation23_spill]] %s2961_s10 }
   0xa   :  { %2976 = sst [smem:[#allocation24_spill]] %s2962_s11 }
   0xb   :  { %16 = vsyncpa [#allocation4], 0 }
   0xc   :  { %18 = vsyncpa [#allocation4 + $0x1], 0 }
   0xd   :  { %19 = vsyncpa [#allocation6], 0 }
   0xe   :  { %21 = vsyncpa [#allocation6 + $0x1], 0  ;;  %s2549_s17 = smov 0   ;;  %s2551_s18 = smov 0  }
   0xf   :  { %s2553_s19 = smov 0   ;;  %s2555_s20 = smov 0  }
  0x10   :  { %s2557_s21 = smov 0   ;;  %s2559_s22 = smov 0  }
  0x11   :  { %s2561_s23 = smov 0   ;;  %s2563_s24 = smov 0  }
  0x12 LB: > { %2977 = sst [smem:[#allocation10_spill]] %s2457_s19  ;;  %s2963_s25 = sadd.s32 4294967295, %s2477_s24   ;;  %s2477_s24 = sphi %s2563_s24, %s27_s24   ;;  %s2473_s23 = sphi %s2561_s23, %s3004_s23   ;;  %s2469_s22 = sphi %s2559_s22, %s3008_s22   ;;  %s2465_s21 = sphi %s2557_s21, %s3002_s21   ;;  %s2461_s20 = sphi %s2555_s20, %s3007_s20   ;;  %s2457_s19 = sphi %s2553_s19, %s3001_s19   ;;  %s2453_s18 = sphi %s2551_s18, %s3006_s18   ;;  %s2449_s17 = sphi %s2549_s17, %s3005_s17  }
  0x13   : > { %2978 = sst [smem:[#allocation11_spill]] %s2473_s23  ;;  %s36_s26 = sadd.s32 1, %s2469_s22 }
  0x14   : > { %p37_p0 = scmp.ge.s32.totalorder %s36_s26, 2  ;;  %s39_s27 = sadd.s32 1, %s2473_s23 }
  0x15   : > { %s124_s28 = sadd.s32 1, %s2457_s19  ;;  %p131_p1 = scmp.ne.s32.totalorder %s2457_s19, %s2453_s18 }
  0x16   : > { %s3010_s26 = smov (%p37_p0, %s36_s26), 0  ;;  %s3012_s27 = smov (!%p37_p0, %s39_s27), %s2473_s23 }
  0x17   : > { %2979 = sst [smem:[#allocation12_spill]] %s3010_s26  ;;  %s121_s29 = ssub.s32 %s2469_s22, %s3010_s26 }
  0x18   : > { %p132_p2 = scmp.eq.s32.totalorder %s2477_s24, 0  ;;  %p41_p3 = scmp.ge.s32.totalorder %s3012_s27, 2 }
  0x19   : > { %p122_p4 = scmp.eq.s32.totalorder %s121_s29, 0  ;;  %p137_p6 = scmp.ne.s32.totalorder %s2453_s18, %s2449_s17 }
  0x1a   : > { %p133_p5 = por %p132_p2, %p131_p1  ;;  %s3014_s27 = smov (%p41_p3, %s3012_s27), 0 }
  0x1b   : > { %2980 = sst [smem:[#allocation13_spill]] %s3014_s27  ;;  %p138_p7 = scmp.eq.s32.totalorder %s2963_s25, 0 }
  0x1c   : > { %s2603_s30 = scalar_select %p122_p4, %s2457_s19, %s124_s28  }
  0x1d   : > { %p2218_p8 = scmp.lt.s32.totalorder %s2477_s24, 4  ;;  %s2609_s12 = sand.u32 1, %s2457_s19  }
  0x1e   : > { %2981 = sst [smem:[#allocation14_spill]] %s2603_s30  ;;  %p2611_p9 = por %p138_p7, %p137_p6 }
  0x1f   : > { %s421_s14 = sand.u32 1, %s2477_s24   ;;  %p2616_p10 = pnand %p2218_p8, %p133_p5 }
  0x20   : > { %s1771_s16 = sshll.u32 %s2609_s12, 8  ;;  %s2115_s17 = sshll.u32 %s2469_s22, 8 }
  0x21   : > { %s2984_s6 = sld [smem:[#allocation19_spill]]  ;;  %s425_s27 = scalar_lea.vmem [#allocation5], %s1771_s16 }
  0x22   : > { %s433_s26 = sshll.u32 %s425_s27, 4  ;;  %p1777_p11 = scmp.ge.s32.totalorder %s2477_s24, 1  ;;  %s434_s26 = int_to_ptr.vmem [resolvable:$true] %s433_s26 }
  0x23   : > { %s2626_s30 = scalar_lea.sflag [#allocation6], %s421_s14  ;;  %s2479_s19 = smov 256  }
  0x24   : > { %s2480_s9 = smov 16   ;;  %p470_p12 = scmp.lt.s32.totalorder %s2477_s24, 5 }
  0x25   : > { %s2199_s27 = smul.u32 192, %s2469_s22  ;;  %s2986_s3 = sld [smem:[#allocation16_spill]] }
  0x26   : > { %p2632_p13 = pnand %p1777_p11, %p470_p12  ;;  %s2116_s11 = sshll.u32 %s2469_s22, 7 }
  0x27   : > { %s430_s25 = scalar_lea.hbm %s2984_s6, %s2115_s17  ;;  %s2987_s7 = sld [smem:[#allocation20_spill]] }
  0x28   : > { %s431_s23 = sshll.u32 %s430_s25, 4  ;;  %s2198_s25 = smul.u32 192, %s2609_s12  ;;  %s432_s23 = int_to_ptr.hbm [resolvable:$true] %s431_s23 }
  0x29   : > { %2214 = dma.hbm_to_vmem [thread:$0]  (!%p2616_p10), %s432_s23, 4096, %s434_s26, %s2626_s30, %s2479_s19, %s2479_s19, %s2480_s9  }
  0x2a   : > { %s388_s14 = scalar_lea.vmem [#allocation3], %s2198_s25  ;;  %s1774_s9 = sshll.u32 %s2609_s12, 7 }
  0x2b   : > { %s393_s29 = scalar_lea.hbm %s2986_s3, %s2199_s27  ;;  %s396_s6 = sshll.u32 %s388_s14, 4  ;;  %s397_s6 = int_to_ptr.vmem [resolvable:$true] %s396_s6 }
  0x2c   : > { %s394_s8 = sshll.u32 %s393_s29, 4  ;;  %s385_s19 = scalar_lea.sflag [#allocation4], %s2609_s12  ;;  %s395_s8 = int_to_ptr.hbm [resolvable:$true] %s394_s8 }
  0x2d   : > { %s2481_s23 = smov 192   ;;  %s2482_s26 = smov 12  }
  0x2e   : > { %2211 = dma.hbm_to_vmem [thread:$0]  (!%p2616_p10), %s395_s8, 3072, %s397_s6, %s385_s19, %s2481_s23, %s2481_s23, %s2482_s26  }
  0x2f   : > { %s452_s10 = scalar_lea.hbm %s2987_s7, %s2116_s11  ;;  %s447_s16 = scalar_lea.vmem [#allocation7], %s1774_s9 }
  0x30   : > { %s455_s27 = sshll.u32 %s447_s16, 4  ;;  %s453_s25 = sshll.u32 %s452_s10, 4  ;;  %s456_s27 = int_to_ptr.vmem [resolvable:$true] %s455_s27  ;;  %s454_s25 = int_to_ptr.hbm [resolvable:$true] %s453_s25 }
  0x31   : > { %s2483_s28 = smov 64   ;;  %s2484_s29 = smov 4  }
  0x32   : > { %2217 = dma.hbm_to_vmem [thread:$0]  (!%p2616_p10), %s454_s25, 2048, %s456_s27, %s2626_s30, %s2483_s28, %s2483_s28, %s2484_s29  }
  0x33   : > { %474 = sbr.rel (%p2632_p13) target bundleno = 2112 (0x840), region = 64  ;;  %s476_s6 = sand.u32 (!%p2632_p13), 1, %s2453_s18  }
  0x34   : > { %s2200_s8 = smul.u32 (!%p2632_p13), 192, %s476_s6  ;;  %s477_s12 = scalar_lea.sflag (!%p2632_p13), [#allocation4], %s476_s6 }
  0x36   : > { %s2655_s14 = scalar_lea.vmem (!%p2632_p13), [#allocation3], %s2200_s8 }
  0x38   : > { %2440 = dma.done.wait (%p2611_p9), %s477_s12, 3072  }
  0x39   : > { %2442 = vsyncadd (%p2611_p9), %s477_s12, 4294964224  ;;  %s2988_s4 = sadd.s32 4294967295, %s2477_s24   ;;  %s1778_s10 = sshll.u32 %s476_s6, 8 }
  0x3a   : > { %s486_s5 = sand.u32 1, %s2988_s4   ;;  %s2663_s30 = scalar_lea.vmem [#allocation5], %s1778_s10 }
  0x3b   : > { %s487_s11 = scalar_lea.sflag [#allocation6], %s486_s5 }
  0x3c   : > { %2444 = dma.done.wait (%p2611_p9), %s487_s11, 6144  }
  0x3d   : > { %2446 = vsyncadd (%p2611_p9), %s487_s11, 4294961152  ;;  %s1779_s15 = sshll.u32 %s476_s6, 7  ;;  %p572_p0 = scmp.lt.s32.totalorder %s2465_s21, 1 }
  0x3e   : > { %p576_p1 = scmp.lt.s32.totalorder %s2461_s20, 1  ;;  %s2989_s0 = sld [smem:[#allocation15_spill]] }
  0x3f   : > { %s3016_s21 = smov (!%p572_p0, %s2465_s21), 1  ;;  %s2990_s4 = sld [smem:[#allocation23_spill]] }
  0x40   : > { %s2673_s17 = scalar_select %p576_p1, %s2461_s20, 1 }
  0x41   : > { %s2675_s9 = sshll.u32 %s3016_s21, 3  ;;  %s2991_s19 = sld [smem:[#allocation17_spill]] }
  0x42   : > { %s2201_s6 = smul.u32 3, %s2673_s17  ;;  %s2117_s8 = sshll.u32 %s2673_s17, 6 }
  0x43   : > { %s2992_s7 = sld [smem:[#allocation18_spill]]  ;;  %s2709_s29 = scalar_lea.vmem [#allocation7], %s1779_s15 }
  0x44   : > { %s575_s23 = scalar_lea.vmem %s2989_s0, %s2675_s9  ;;  %s2993_s25 = sld [smem:[#allocation24_spill]] }
  0x45   : > { %s594_s5 = scalar_lea.vmem %s2990_s4, %s2675_s9  ;;  %p1785_p2 = scmp.ne.s32.totalorder %s2461_s20, 0 }
  0x47   : > { %s2698_s13 = scalar_lea.vmem %s2991_s19, %s2201_s6  ;;  %603 = sbr.rel (%p1785_p2) target bundleno = 78 (0x4e), region = 80 }
  0x49   : > { %s2703_s26 = scalar_lea.vmem %s2992_s7, %s2117_s8 }
  0x4a   : > { %s598_s28 = scalar_lea.vmem %s2993_s25, %s2675_s9 }
  0x4c   : > { %v604_v0 = vld [vmem:[%s575_s23] sm:$0xff] }
  0x4d   : > { %605 = vst [vmem:[#allocation2] sm:$0xff] %v604_v0 }
  0x4e PF: > { %v1872_v2 = vld [vmem:[%s2655_s14 + $0xa8] sm:$0xf]  ;;  %v2140_v3 = vld [vmem:[%s2655_s14 + $0xb0] sm:$0xf0]  ;;  %v2139_v6 = vld [vmem:[%s2655_s14 + $0xac] sm:$0xf]  ;;  %s2994_s7 = scalar_lea.vmem %s2952_s1, %s2673_s17 }
  0x4f   : > { %v1873_v5 = vor.u32 %v2140_v3, %v1872_v2  ;;  %v1874_v7 = vld [vmem:[%s2655_s14 + $0xb4] sm:$0xf0]  ;;  %v1880_v8 = vld [vmem:[%s2655_s14 + $0xb0] sm:$0xf]  ;;  %v2141_v10 = vld [vmem:[%s2655_s14 + $0xb8] sm:$0xf0] }
  0x50   : > { %v1877_v9 = vor.u32 %v2139_v6, %v1874_v7  ;;  %v1881_v11 = vor.u32 %v2141_v10, %v1880_v8  ;;  %v1860_v12 = vld [vmem:[%s2655_s14 + $0x90] sm:$0xf]  ;;  %v2137_v13 = vld [vmem:[%s2655_s14 + $0x98] sm:$0xf0]  ;;  %v2136_v14 = vld [vmem:[%s2655_s14 + $0x94] sm:$0xf] }
  0x51   : > { %804 = vmatpush.bf16.msra.mxu0 %v1873_v5  ;;  %v1861_v15 = vor.u32 %v2137_v13, %v1860_v12  ;;  %v1862_v16 = vld [vmem:[%s2655_s14 + $0x9c] sm:$0xf0]  ;;  %v1868_v17 = vld [vmem:[%s2655_s14 + $0x98] sm:$0xf]  ;;  %v2138_v18 = vld [vmem:[%s2655_s14 + $0xa0] sm:$0xf0] }
  0x52   : > { %817 = vmatpush.bf16.msra.mxu1 %v1877_v9  ;;  %830 = vmatpush.bf16.msra.mxu2 %v1881_v11  ;;  %v1865_v19 = vor.u32 %v2136_v14, %v1862_v16  ;;  %v1869_v20 = vor.u32 %v2138_v18, %v1868_v17  ;;  %v1848_v21 = vld [vmem:[%s2655_s14 + $0x78] sm:$0xf]  ;;  %v2134_v22 = vld [vmem:[%s2655_s14 + $0x80] sm:$0xf0]  ;;  %v2133_v23 = vld [vmem:[%s2655_s14 + $0x7c] sm:$0xf] }
  0x53   : > { %v1849_v24 = vor.u32 %v2134_v22, %v1848_v21  ;;  %v1850_v25 = vld [vmem:[%s2655_s14 + $0x84] sm:$0xf0]  ;;  %v1856_v26 = vld [vmem:[%s2655_s14 + $0x80] sm:$0xf]  ;;  %v2135_v27 = vld [vmem:[%s2655_s14 + $0x88] sm:$0xf0] }
  0x54   : > { %v2712_v1 = vld [vmem:[#allocation2] sm:$0xff]  ;;  %v2485_v28 = vmov 128.0   ;;  %v1853_v29 = vor.u32 %v2133_v23, %v1850_v25  ;;  %v1857_v30 = vor.u32 %v2135_v27, %v1856_v26  ;;  %v1836_v31 = vld [vmem:[%s2655_s14 + $0x60] sm:$0xf]  ;;  %v2131_v32 = vld [vmem:[%s2655_s14 + $0x68] sm:$0xf0] }
  0x55   : > { %v608_v4 = vmul.f32 %v2712_v1, %v2712_v1  ;;  %805 = vmatpush.bf16.msra.mxu0 %v1861_v15  ;;  %2295 = vrcp.f32 %v2485_v28  ;;  %v2130_v33 = vld [vmem:[%s2655_s14 + $0x64] sm:$0xf]  ;;  %v1837_v34 = vor.u32 %v2131_v32, %v1836_v31  ;;  %v1838_v35 = vld [vmem:[%s2655_s14 + $0x6c] sm:$0xf0]  ;;  %v1844_v36 = vld [vmem:[%s2655_s14 + $0x68] sm:$0xf] }
  0x56   : > { %818 = vmatpush.bf16.msra.mxu1 %v1865_v19  ;;  %831 = vmatpush.bf16.msra.mxu2 %v1869_v20  ;;  %v2132_v37 = vld [vmem:[%s2655_s14 + $0x70] sm:$0xf0]  ;;  %v1841_v38 = vor.u32 %v2130_v33, %v1838_v35  ;;  %v1824_v41 = vld [vmem:[%s2655_s14 + $0x48] sm:$0xf]  ;;  %v2127_v43 = vld [vmem:[%s2655_s14 + $0x4c] sm:$0xf] }
  0x57   : > { %609 = vadd.xlane.f32.xlu0 %v608_v4  ;;  %v1845_v39 = vor.u32 %v2132_v37, %v1844_v36  ;;  %v2128_v42 = vld [vmem:[%s2655_s14 + $0x50] sm:$0xf0]  ;;  %v1826_v45 = vld [vmem:[%s2655_s14 + $0x54] sm:$0xf0]  ;;  %v1832_v46 = vld [vmem:[%s2655_s14 + $0x50] sm:$0xf] }
  0x58   : > { %v1825_v44 = vor.u32 %v2128_v42, %v1824_v41  ;;  %v2129_v47 = vld [vmem:[%s2655_s14 + $0x58] sm:$0xf0]  ;;  %v1829_v48 = vor.u32 %v2127_v43, %v1826_v45  ;;  %v1812_v51 = vld [vmem:[%s2655_s14 + $0x30] sm:$0xf]  ;;  %v2124_v53 = vld [vmem:[%s2655_s14 + $0x34] sm:$0xf] }
  0x59   : > { %806 = vmatpush.bf16.msra.mxu0 %v1849_v24  ;;  %v1833_v49 = vor.u32 %v2129_v47, %v1832_v46  ;;  %v2125_v52 = vld [vmem:[%s2655_s14 + $0x38] sm:$0xf0]  ;;  %v1814_v55 = vld [vmem:[%s2655_s14 + $0x3c] sm:$0xf0]  ;;  %v1820_v56 = vld [vmem:[%s2655_s14 + $0x38] sm:$0xf] }
  0x5a   : > { %819 = vmatpush.bf16.msra.mxu1 %v1853_v29  ;;  %832 = vmatpush.bf16.msra.mxu2 %v1857_v30  ;;  %v1813_v54 = vor.u32 %v2125_v52, %v1812_v51  ;;  %v2126_v57 = vld [vmem:[%s2655_s14 + $0x40] sm:$0xf0]  ;;  %v1817_v58 = vor.u32 %v2124_v53, %v1814_v55  ;;  %v1800_v61 = vld [vmem:[%s2655_s14 + $0x18] sm:$0xf]  ;;  %v2121_v63 = vld [vmem:[%s2655_s14 + $0x1c] sm:$0xf] }
  0x5b   : > { %v2296_v40 = vpop.eup %2295  ;;  %v1821_v59 = vor.u32 %v2126_v57, %v1820_v56  ;;  %v2122_v62 = vld [vmem:[%s2655_s14 + $0x20] sm:$0xf0]  ;;  %v1802_v2 = vld [vmem:[%s2655_s14 + $0x24] sm:$0xf0]  ;;  %v1808_v3 = vld [vmem:[%s2655_s14 + $0x20] sm:$0xf] }
  0x5c   : > { %v612_v50 = vmul.f32 128.0, %v2296_v40  ;;  %v1801_v0 = vor.u32 %v2122_v62, %v1800_v61  ;;  %v2123_v4 = vld [vmem:[%s2655_s14 + $0x28] sm:$0xf0]  ;;  %v1805_v5 = vor.u32 %v2121_v63, %v1802_v2  ;;  %v1788_v7 = vld [vmem:[%s2655_s14] sm:$0xf]  ;;  %vm616_vm0 = vweird.f32 %v2296_v40  ;;  %s2487_s15 = smov 96  }
  0x5d   : > { %807 = vmatpush.bf16.msra.mxu0 %v1837_v34  ;;  %v1809_v6 = vor.u32 %v2123_v4, %v1808_v3  ;;  %v2119_v8 = vld [vmem:[%s2655_s14 + $0x8] sm:$0xf0]  ;;  %v2118_v9 = vld [vmem:[%s2655_s14 + $0x4] sm:$0xf]  ;;  %v1790_v12 = vld [vmem:[%s2655_s14 + $0xc] sm:$0xf0] }
  0x5e   : > { %820 = vmatpush.bf16.msra.mxu1 %v1841_v38  ;;  %833 = vmatpush.bf16.msra.mxu2 %v1845_v39  ;;  %v613_v60 = vsub.f32 1.0, %v612_v50  ;;  %v1789_v11 = vor.u32 %v2119_v8, %v1788_v7  ;;  %v1796_v13 = vld [vmem:[%s2655_s14 + $0x8] sm:$0xf]  ;;  %v2120_v14 = vld [vmem:[%s2655_s14 + $0x10] sm:$0xf0]  ;;  %v1793_v15 = vor.u32 %v2118_v9, %v1790_v12  ;;  %s2486_s14 = smov 32  }
  0x5f   : > { %v1797_v16 = vor.u32 %v2120_v14, %v1796_v13  ;;  %v2293_v28 = vld [vmem:[%s2994_s7] ss:$0 sm:$0xff]  ;;  %vm914_vm4 = vcmask 1043456   ;;  %s2995_s6 = sld [smem:[#allocation21_spill]]  ;;  %s2488_s8 = smov 64   ;;  %vm856_vm5 = vcmask 261120  }
  0x60   : > { %v614_v10 = vmul.f32 %v2296_v40, %v613_v60  ;;  %v668_v33 = vld [vmem:[%s2698_s13] sm:$0x7]  ;;  %s2996_s4 = sld [smem:[#allocation22_spill]]  ;;  %vm875_vm6 = vcmask 523264   ;;  %vm897_vm7 = vcmask 64512   ;;  %s2998_s13 = scalar_lea.vmem %s2953_s2, %s2673_s17 }
  0x61   : > { %808 = vmatpush.bf16.msra.mxu0 %v1825_v44  ;;  %v670_v34 = vperm.slane %v668_v33, 0  ;;  %v671_v35 = vperm.slane %v668_v33, 1  ;;  %v672_v41 = vperm.slane %v668_v33, 2  ;;  %p2112_p3 = scmp.ne.s32.totalorder %s2461_s20, 1 }
  0x62   : > { %821 = vmatpush.bf16.msra.mxu1 %v1829_v48  ;;  %834 = vmatpush.bf16.msra.mxu2 %v1833_v49  ;;  %v615_v17 = vadd.f32 %v2296_v40, %v614_v10 }
  0x64   : > { %v2764_v18 = vsel %vm616_vm0, %v2296_v40, %v615_v17 }
  0x65   : > { %809 = vmatpush.bf16.msra.mxu0 %v1813_v54  ;;  %v843_v49 = vld [vmem:[%s2995_s6] sm:$0xff] }
  0x66   : > { %822 = vmatpush.bf16.msra.mxu1 %v1817_v58  ;;  %835 = vmatpush.bf16.msra.mxu2 %v1821_v59  ;;  %v844_v52 = vld [vmem:[%s2996_s4] sm:$0xff] }
  0x69   : > { %810 = vmatpush.bf16.msra.mxu0 %v1801_v0 }
  0x6a   : > { %823 = vmatpush.bf16.msra.mxu1 %v1805_v5  ;;  %836 = vmatpush.bf16.msra.mxu2 %v1809_v6 }
  0x6d   : > { %811 = vmatpush.bf16.msra.mxu0 %v1789_v11 }
  0x6e   : > { %824 = vmatpush.bf16.msra.mxu1 %v1793_v15  ;;  %837 = vmatpush.bf16.msra.mxu2 %v1797_v16 }
  0xca   : > { %v610_v19 = vpop.xlane.xlu0 %609 }
  0xcb   : > { %v618_v20 = vmul.f32 %v2764_v18, %v610_v19 }
  0xcd   : > { %v619_v21 = vadd.f32 1e-06, %v618_v20 }
  0xcf   : > { %2297 = vrsqrt.f32 %v619_v21  ;;  %vm626_vm2 = vweird.f32 %v619_v21 }
  0xd5   : > { %v2298_v22 = vpop.eup %2297 }
  0xd6   : > { %v621_v23 = vmul.f32 %v2298_v22, %v619_v21  ;;  %vm627_vm1 = vweird.f32 %v2298_v22 }
  0xd7   : > { %vm628_vm3 = vmor %vm626_vm2, %vm627_vm1 }
  0xd8   : > { %v622_v24 = vmul.f32 %v2298_v22, %v621_v23 }
  0xda   : > { %v623_v25 = vmul.f32 0.5, %v622_v24 }
  0xdc   : > { %v624_v26 = vsub.f32 1.5, %v623_v25 }
  0xde   : > { %v625_v27 = vmul.f32 %v2298_v22, %v624_v26 }
  0xe0   : > { %v629_v29 = vsel %vm628_vm3, %v2298_v22, %v625_v27  ;;  %v845_v22 = vld [vmem:[%s594_s5] sm:$0xff] }
  0xe1   : > { %v630_v30 = vmul.f32 %v629_v29, %v2712_v1 }
  0xe3   : > { %v634_v31 = vmul.f32 %v2293_v28, %v630_v30 }
  0xe5   : > { %v635_v32 = vpack.c.bf16 %v634_v31, %v634_v31 }
  0xe7   : > { %812 = vmatmul.bf16.vlgmr.msra.gmra.mxu0 %v635_v32  ;;  %825 = vmatmul.bf16.vlgmr.msra.gmra.mxu1 %v635_v32 }
  0xe8   : > { %838 = vmatmul.bf16.vlgmr.msra.gmra.mxu2 %v635_v32 }
 0x164   : > { %v813_v36 = vpop.f32.mrf.mxu0  ;;  %v826_v37 = vpop.f32.mrf.mxu1 }
 0x165   : > { %v2774_v38 = vadd.f32 %v813_v36, %v670_v34  ;;  %v827_v39 = vadd.f32 %v826_v37, %v671_v35 }
 0x167   : > { %867 = vrot.lane.b32.xlu1 %v827_v39, %s2486_s14  ;;  %853 = vrot.lane.b32.xlu2 %v2774_v38, %s2486_s14  ;;  %v861_v40 = vsub.f32 0.0, %v827_v39  ;;  %v847_v46 = vsub.f32 0.0, %v2774_v38  ;;  %v860_v55 = vmul.f32 %v843_v49, %v827_v39  ;;  %v846_v62 = vmul.f32 %v843_v49, %v2774_v38 }
 0x169   : > { %863 = vrot.lane.b32.xlu0 %v861_v40, %s2487_s15 }
 0x16b   : > { %v839_v42 = vpop.f32.mrf.mxu2 }
 0x16c   : > { %v840_v43 = vadd.f32 %v839_v42, %v672_v41  ;;  %v815_v44 = vpop.f32.mrf.mxu0  ;;  %v828_v45 = vpop.f32.mrf.mxu1 }
 0x16e   : > { %v2778_v47 = vpack.c.bf16 %v840_v43, %v840_v43 }
 0x16f   : > { %950 = vrot.lane.b32.xlu2 %v861_v40, %s2486_s14  ;;  %849 = vrot.lane.b32.xlu1 %v847_v46, %s2487_s15 }
 0x170   : > { %v916_v48 = vsel %vm914_vm4, %v2778_v47, 0 }
 0x171   : > { %925 = vmatpush.bf16.msra.mxu3 %v916_v48  ;;  %932 = vrot.lane.b32.xlu0 %v843_v49, %s2488_s8 }
 0x173   : > { %v841_v50 = vpop.f32.mrf.mxu2 }
 0x177   : > { %936 = vrot.lane.b32.xlu2 %v847_v46, %s2486_s14  ;;  %953 = vrot.lane.b32.xlu1 %v827_v39, %s2487_s15 }
 0x17f   : > { %939 = vrot.lane.b32.xlu1 %v2774_v38, %s2487_s15 }
 0x1c1   : > { %v854_v56 = vpop.permute.xlu2 %853 }
 0x1c9   : > { %v951_v3 = vpop.permute.xlu2 %950 }
 0x1d1   : > { %v937_v8 = vpop.permute.xlu2 %936 }
 0x1d9   : > { %v868_v51 = vpop.permute.xlu1 %867 }
 0x1db   : > { %v864_v53 = vpop.permute.xlu0 %863 }
 0x1dc   : > { %v870_v54 = vsel %vm856_vm5, %v864_v53, %v868_v51 }
 0x1dd   : > { %v871_v57 = vmul.f32 %v870_v54, %v844_v52 }
 0x1df   : > { %v872_v58 = vadd.f32 %v871_v57, %v860_v55 }
 0x1e1   : > { %v850_v59 = vpop.permute.xlu1 %849  ;;  %v874_v60 = vpack.c.bf16 %v872_v58, %v872_v58 }
 0x1e2   : > { %v857_v61 = vsel %vm856_vm5, %v850_v59, %v854_v56  ;;  %v2149_v59 = vld [vmem:[%s2703_s26 + $0x38] sm:$0xff] }
 0x1e3   : > { %v858_v63 = vmul.f32 %v857_v61, %v844_v52  ;;  %v880_v0 = vsel %vm875_vm6, %v874_v60, 0  ;;  %v933_v12 = vpop.permute.xlu0 %932  ;;  %1096 = vmatpush.bf16.msrb.mxu1 %v2149_v59  ;;  %v2148_v60 = vld [vmem:[%s2703_s26 + $0x30] sm:$0xff]  ;;  %v2146_v61 = vld [vmem:[%s2703_s26 + $0x20] sm:$0xff] }
 0x1e4   : > { %889 = vmatpush.bf16.xpose.msrb.mxu0 %v880_v0  ;;  %v949_v13 = vmul.f32 %v933_v12, %v827_v39  ;;  %v935_v17 = vmul.f32 %v933_v12, %v2774_v38  ;;  %v2143_v0 = vld [vmem:[%s2703_s26 + $0x8] sm:$0xff]  ;;  %v2034_v12 = vld [vmem:[%s2663_s30 + $0xf0] sm:$0xf0]  ;;  %v1994_v59 = vld [vmem:[%s2663_s30 + $0x98] sm:$0xf0] }
 0x1e5   : > { %v859_v2 = vadd.f32 %v858_v63, %v846_v62  ;;  %v2145_v62 = vld [vmem:[%s2703_s26 + $0x18] sm:$0xff]  ;;  %v2144_v63 = vld [vmem:[%s2703_s26 + $0x10] sm:$0xff] }
 0x1e7   : > { %v873_v4 = vpack.c.bf16 %v859_v2, %v859_v2  ;;  %1097 = vmatpush.bf16.msrb.mxu1 %v2148_v60 }
 0x1e9   : > { %v954_v5 = vpop.permute.xlu1 %953 }
 0x1ea   : > { %v956_v6 = vsel %vm856_vm5, %v951_v3, %v954_v5 }
 0x1eb   : > { %v957_v7 = vmul.f32 %v956_v6, %v844_v52  ;;  %1882 = vmatmul.msk.bf16.vlgmr.msrb.gmra.mxu0 %vm875_vm6, %v873_v4  ;;  %v2142_v4 = vld [vmem:[%s2703_s26] sm:$0xff] }
 0x1ed   : > { %959 = vrot.lane.b32.xlu1 %v957_v7, %s2488_s8 }
 0x1f1   : > { %v940_v9 = vpop.permute.xlu1 %939 }
 0x1f2   : > { %v942_v10 = vsel %vm856_vm5, %v937_v8, %v940_v9  ;;  %v2032_v8 = vld [vmem:[%s2663_s30 + $0xe0] sm:$0xf]  ;;  %v2180_v9 = vld [vmem:[%s2663_s30 + $0xec] sm:$0xf0] }
 0x1f3   : > { %v943_v11 = vmul.f32 %v942_v10, %v844_v52  ;;  %v2178_v10 = vld [vmem:[%s2663_s30 + $0xe4] sm:$0xf] }
 0x1f5   : > { %945 = vrot.lane.b32.xlu0 %v943_v11, %s2488_s8  ;;  %v2033_v11 = vor.u32 %v2180_v9, %v2032_v8  ;;  %v1952_v9 = vld [vmem:[%s2663_s30 + $0x40] sm:$0xf] }
 0x1f7   : > { %1324 = vmatpush.bf16.msrb.mxu2 %v2033_v11  ;;  %v2158_v11 = vld [vmem:[%s2663_s30 + $0x44] sm:$0xf] }
 0x25f   : > { %v960_v14 = vpop.permute.xlu1 %959 }
 0x260   : > { %v962_v15 = vadd.f32 %v960_v14, %v949_v13  ;;  %v2040_v13 = vld [vmem:[%s2663_s30 + $0xe8] sm:$0xf]  ;;  %v2181_v14 = vld [vmem:[%s2663_s30 + $0xf4] sm:$0xf0] }
 0x262   : > { %v964_v16 = vpack.c.bf16 %v962_v15, %v962_v15  ;;  %v2037_v15 = vor.u32 %v2178_v10, %v2034_v12  ;;  %v2160_v10 = vld [vmem:[%s2663_s30 + $0x4c] sm:$0xf0] }
 0x263   : > { %v1953_v12 = vor.u32 %v2160_v10, %v1952_v9  ;;  %v2183_v10 = vld [vmem:[%s2709_s29 + $0x8] sm:$0xff] }
 0x264   : > { %969 = vrot.lane.b32.xlu0 %v964_v16, %s2488_s8  ;;  %v2041_v16 = vor.u32 %v2181_v14, %v2040_v13  ;;  %v1954_v13 = vld [vmem:[%s2663_s30 + $0x50] sm:$0xf0]  ;;  %v1960_v14 = vld [vmem:[%s2663_s30 + $0x48] sm:$0xf] }
 0x267   : > { %v946_v19 = vpop.permute.xlu0 %945 }
 0x268   : > { %v948_v20 = vadd.f32 %v946_v19, %v935_v17  ;;  %v891_v21 = vpop.f32.mrf.mxu0  ;;  %v2179_v17 = vld [vmem:[%s2663_s30 + $0xec] sm:$0xf]  ;;  %v2042_v19 = vld [vmem:[%s2663_s30 + $0xf8] sm:$0xf0] }
 0x269   : > { %v895_v23 = vmul.f32 0.125, %v891_v21 }
 0x26a   : > { %v963_v24 = vpack.c.bf16 %v948_v20, %v948_v20  ;;  %v2045_v20 = vor.u32 %v2179_v17, %v2042_v19  ;;  %v2159_v19 = vld [vmem:[%s2663_s30 + $0x4c] sm:$0xf] }
 0x26b   : > { %v896_v25 = vadd.f32 %v895_v23, %v845_v22 }
 0x26c   : > { %966 = vrot.lane.b32.xlu0 %v963_v24, %s2488_s8 }
 0x26d   : > { %v898_v26 = vsel %vm897_vm7, %v896_v25, -inf }
 0x26e   : > { %899 = vmax.xlane.f32.xlu2 %v898_v26  ;;  %v2176_v26 = vld [vmem:[%s2663_s30 + $0xcc] sm:$0xf0] }
 0x270   : > { %v893_v27 = vpop.f32.mrf.mxu0 }
 0x271   : > { %v2174_v27 = vld [vmem:[%s2663_s30 + $0xc4] sm:$0xf] }
 0x2d6   : > { %v970_v28 = vpop.permute.xlu0 %969 }
 0x2d7   : > { %v975_v29 = vsel %vm875_vm6, %v970_v28, 0 }
 0x2d8   : > { %984 = vmatpush.bf16.xpose.msrb.mxu3 %v975_v29  ;;  %v2018_v29 = vld [vmem:[%s2663_s30 + $0xd0] sm:$0xf0] }
 0x2de   : > { %v967_v39 = vpop.permute.xlu0 %966 }
 0x2e1   : > { %v900_v30 = vpop.xlane.xlu2 %899 }
 0x2e2   : > { %v901_v31 = vsub.f32 %v896_v25, %v900_v30  ;;  %v2016_v25 = vld [vmem:[%s2663_s30 + $0xc0] sm:$0xf]  ;;  %v2024_v30 = vld [vmem:[%s2663_s30 + $0xc8] sm:$0xf] }
 0x2e3   : > { %v2017_v28 = vor.u32 %v2176_v26, %v2016_v25  ;;  %v2154_v25 = vld [vmem:[%s2663_s30 + $0x24] sm:$0xf] }
 0x2e4   : > { %v902_v32 = vmul.f32 1.442695, %v901_v31  ;;  %v2177_v31 = vld [vmem:[%s2663_s30 + $0xd4] sm:$0xf0] }
 0x2e5   : > { %1325 = vmatpush.bf16.msrb.mxu2 %v2017_v28  ;;  %v1944_v28 = vld [vmem:[%s2663_s30 + $0x28] sm:$0xf] }
 0x2e6   : > { %2299 = vpow2.f32 %v902_v32  ;;  %v2025_v32 = vor.u32 %v2177_v31, %v2024_v30 }
 0x2ec   : > { %v2300_v33 = vpop.eup %2299 }
 0x2ed   : > { %v904_v34 = vsel %vm897_vm7, %v2300_v33, 0.0 }
 0x2ee   : > { %905 = vadd.xlane.f32.xlu1 %v904_v34  ;;  %v2026_v34 = vld [vmem:[%s2663_s30 + $0xd8] sm:$0xf0] }
 0x361   : > { %v906_v35 = vpop.xlane.xlu1 %905 }
 0x362   : > { %2301 = vrcp.f32 %v906_v35 }
 0x368   : > { %v2302_v36 = vpop.eup %2301 }
 0x369   : > { %v908_v37 = vmul.f32 %v2302_v36, %v2300_v33  ;;  %v2175_v33 = vld [vmem:[%s2663_s30 + $0xcc] sm:$0xf]  ;;  %v2000_v36 = vld [vmem:[%s2663_s30 + $0xa0] sm:$0xf] }
 0x36a   : > { %v2029_v35 = vor.u32 %v2175_v33, %v2026_v34  ;;  %v1920_v34 = vld [vmem:[%s2663_s30] sm:$0xf] }
 0x36b   : > { %v909_v38 = vpack.c.bf16 %v908_v37, %v908_v37  ;;  %v2172_v37 = vld [vmem:[%s2663_s30 + $0xac] sm:$0xf0] }
 0x36d   : > { %1883 = vmatmul.msk.bf16.vlgmr.msra.gmra.mxu3 %vm897_vm7, %v909_v38  ;;  %v2170_v38 = vld [vmem:[%s2663_s30 + $0xa4] sm:$0xf] }
 0x36e   : > { %1337 = vmatpush.bf16.msra.mxu3 %v2037_v15  ;;  %v2161_v15 = vld [vmem:[%s2663_s30 + $0x54] sm:$0xf0] }
 0x36f   : > { %v1961_v17 = vor.u32 %v2161_v15, %v1960_v14 }
 0x37d   : > { %1884 = vmatmul.msk.bf16.vlgmr.msrb.gmra.mxu3 %vm875_vm6, %v967_v39  ;;  %v2001_v39 = vor.u32 %v2172_v37, %v2000_v36  ;;  %v2150_v36 = vld [vmem:[%s2663_s30 + $0x4] sm:$0xf] }
 0x37f   : > { %1326 = vmatpush.bf16.msrb.mxu2 %v2001_v39  ;;  %v1928_v39 = vld [vmem:[%s2663_s30 + $0x8] sm:$0xf] }
 0x3f0   : > { %v927_v40 = vpop.f32.mrf.mxu3 }
 0x3f8   : > { %v929_v41 = vpop.f32.mrf.mxu3 }
 0x3f9   : > { %v2008_v41 = vld [vmem:[%s2663_s30 + $0xa8] sm:$0xf] }
 0x400   : > { %v986_v42 = vpop.f32.mrf.mxu3 }
 0x401   : > { %v990_v43 = vmul.f32 0.125, %v986_v42  ;;  %v2173_v42 = vld [vmem:[%s2663_s30 + $0xb4] sm:$0xf0] }
 0x403   : > { %v991_v44 = vadd.f32 %v990_v43, %v845_v22 }
 0x405   : > { %v992_v45 = vsel %vm897_vm7, %v991_v44, -inf }
 0x406   : > { %993 = vmax.xlane.f32.xlu0 %v992_v45  ;;  %v2171_v45 = vld [vmem:[%s2663_s30 + $0xac] sm:$0xf] }
 0x408   : > { %v988_v46 = vpop.f32.mrf.mxu3 }
 0x409   : > { %v2010_v46 = vld [vmem:[%s2663_s30 + $0xb8] sm:$0xf0] }
 0x479   : > { %v994_v48 = vpop.xlane.xlu0 %993 }
 0x47a   : > { %v995_v49 = vsub.f32 %v991_v44, %v994_v48  ;;  %v2009_v44 = vor.u32 %v2173_v42, %v2008_v41  ;;  %v2013_v48 = vor.u32 %v2171_v45, %v2010_v46 }
 0x47c   : > { %v996_v50 = vmul.f32 1.442695, %v995_v49  ;;  %v1984_v49 = vld [vmem:[%s2663_s30 + $0x80] sm:$0xf] }
 0x47e   : > { %2303 = vpow2.f32 %v996_v50  ;;  %v2168_v50 = vld [vmem:[%s2663_s30 + $0x8c] sm:$0xf0] }
 0x484   : > { %v2304_v51 = vpop.eup %2303 }
 0x485   : > { %v998_v52 = vsel %vm897_vm7, %v2304_v51, 0.0 }
 0x486   : > { %999 = vadd.xlane.f32.xlu2 %v998_v52  ;;  %v1985_v52 = vor.u32 %v2168_v50, %v1984_v49 }
 0x488   : > { %1327 = vmatpush.bf16.msrb.mxu2 %v1985_v52 }
 0x49e   : > { %1005 = vrot.lane.b32.xlu2 %v2778_v47, %s2488_s8  ;;  %v2147_v47 = vld [vmem:[%s2703_s26 + $0x28] sm:$0xff] }
 0x49f   : > { %1098 = vmatpush.bf16.msrb.mxu1 %v2147_v47  ;;  %v1968_v47 = vld [vmem:[%s2663_s30 + $0x60] sm:$0xf] }
 0x4a3   : > { %1099 = vmatpush.bf16.msrb.mxu1 %v2146_v61  ;;  %v2164_v61 = vld [vmem:[%s2663_s30 + $0x6c] sm:$0xf0] }
 0x4a7   : > { %1100 = vmatpush.bf16.msrb.mxu1 %v2145_v62  ;;  %v2162_v62 = vld [vmem:[%s2663_s30 + $0x64] sm:$0xf] }
 0x4ab   : > { %1101 = vmatpush.bf16.msrb.mxu1 %v2144_v63  ;;  %v1969_v63 = vor.u32 %v2164_v61, %v1968_v47  ;;  %v2197_v47 = vld [vmem:[%s2709_s29 + $0x78] sm:$0xff]  ;;  %v2188_v61 = vld [vmem:[%s2709_s29 + $0x30] sm:$0xff] }
 0x4ad   : > { %1328 = vmatpush.bf16.msrb.mxu2 %v1969_v63  ;;  %v2187_v63 = vld [vmem:[%s2709_s29 + $0x28] sm:$0xff] }
 0x4af   : > { %1102 = vmatpush.bf16.msrb.mxu1 %v2143_v0  ;;  %v1970_v0 = vld [vmem:[%s2663_s30 + $0x70] sm:$0xf0] }
 0x4b1   : > { %1329 = vmatpush.bf16.msrb.mxu2 %v1953_v12  ;;  %v2182_v12 = vld [vmem:[%s2709_s29] sm:$0xff] }
 0x4b3   : > { %1103 = vmatpush.bf16.msrb.mxu1 %v2142_v4  ;;  %v1973_v4 = vor.u32 %v2162_v62, %v1970_v0  ;;  %v2196_v62 = vld [vmem:[%s2709_s29 + $0x70] sm:$0xff]  ;;  %v2195_v0 = vld [vmem:[%s2709_s29 + $0x68] sm:$0xff] }
 0x4b7   : > { %1363 = vmatpush.bf16.msra.mxu1 %v2045_v20  ;;  %v1962_v20 = vld [vmem:[%s2663_s30 + $0x58] sm:$0xf0] }
 0x4bb   : > { %1364 = vmatpush.bf16.msra.mxu1 %v2029_v35  ;;  %v2152_v35 = vld [vmem:[%s2663_s30 + $0xc] sm:$0xf0] }
 0x4bc   : > { %v1921_v37 = vor.u32 %v2152_v35, %v1920_v34 }
 0x4bf   : > { %1365 = vmatpush.bf16.msra.mxu1 %v2013_v48 }
 0x4f9   : > { %v1000_v53 = vpop.xlane.xlu2 %999 }
 0x4fa   : > { %2305 = vrcp.f32 %v1000_v53  ;;  %v1986_v53 = vld [vmem:[%s2663_s30 + $0x90] sm:$0xf0] }
 0x500   : > { %v2306_v54 = vpop.eup %2305 }
 0x501   : > { %v1002_v55 = vmul.f32 %v2306_v54, %v2304_v51  ;;  %v1006_v56 = vpop.permute.xlu2 %1005  ;;  %v2166_v51 = vld [vmem:[%s2663_s30 + $0x84] sm:$0xf]  ;;  %v1992_v54 = vld [vmem:[%s2663_s30 + $0x88] sm:$0xf] }
 0x502   : > { %v1011_v57 = vsel %vm914_vm4, %v1006_v56, 0  ;;  %v1989_v56 = vor.u32 %v2166_v51, %v1986_v53 }
 0x503   : > { %v1003_v58 = vpack.c.bf16 %v1002_v55, %v1002_v55  ;;  %1020 = vmatpush.bf16.msra.mxu0 %v1011_v57  ;;  %v2169_v55 = vld [vmem:[%s2663_s30 + $0x94] sm:$0xf0] }
 0x504   : > { %v1993_v57 = vor.u32 %v2169_v55, %v1992_v54 }
 0x506   : > { %1885 = vmatmul.msk.bf16.vlgmr.msra.gmra.mxu0 %vm897_vm7, %v1003_v58  ;;  %v2167_v58 = vld [vmem:[%s2663_s30 + $0x8c] sm:$0xf] }
 0x507   : > { %1350 = vmatpush.bf16.msrb.mxu0 %v2041_v16  ;;  %v1997_v60 = vor.u32 %v2167_v58, %v1994_v59  ;;  %v1957_v16 = vor.u32 %v2158_v11, %v1954_v13  ;;  %v2191_v11 = vld [vmem:[%s2709_s29 + $0x48] sm:$0xff]  ;;  %v2190_v13 = vld [vmem:[%s2709_s29 + $0x40] sm:$0xff] }
 0x509   : > { %1366 = vmatpush.bf16.msra.mxu1 %v1997_v60  ;;  %v2189_v60 = vld [vmem:[%s2709_s29 + $0x38] sm:$0xff] }
 0x50b   : > { %1351 = vmatpush.bf16.msrb.mxu0 %v2025_v32  ;;  %v1946_v32 = vld [vmem:[%s2663_s30 + $0x38] sm:$0xf0] }
 0x50f   : > { %1352 = vmatpush.bf16.msrb.mxu0 %v2009_v44  ;;  %v1930_v44 = vld [vmem:[%s2663_s30 + $0x18] sm:$0xf0] }
 0x513   : > { %1353 = vmatpush.bf16.msrb.mxu0 %v1993_v57 }
 0x583   : > { %v1022_v2 = vpop.f32.mrf.mxu0 }
 0x584   : > { %1027 = vrot.lane.b32.xlu1 %v1022_v2, %s2488_s8  ;;  %v1976_v2 = vld [vmem:[%s2663_s30 + $0x68] sm:$0xf] }
 0x58b   : > { %v1024_v3 = vpop.f32.mrf.mxu0 }
 0x58c   : > { %v2165_v3 = vld [vmem:[%s2663_s30 + $0x74] sm:$0xf0] }
 0x5f6   : > { %v1028_v5 = vpop.permute.xlu1 %1027 }
 0x5f7   : > { %v1030_v6 = vsel %vm875_vm6, %v927_v40, %v1028_v5  ;;  %v2002_v40 = vld [vmem:[%s2663_s30 + $0xb0] sm:$0xf0]  ;;  %v1977_v5 = vor.u32 %v2165_v3, %v1976_v2  ;;  %v2186_v2 = vld [vmem:[%s2709_s29 + $0x20] sm:$0xff] }
 0x5f8   : > { %v1031_v7 = vpack.c.bf16 %v1030_v6, %v1030_v6  ;;  %v2005_v43 = vor.u32 %v2170_v38, %v2002_v40  ;;  %v2163_v6 = vld [vmem:[%s2663_s30 + $0x6c] sm:$0xf]  ;;  %v1922_v38 = vld [vmem:[%s2663_s30 + $0x10] sm:$0xf0]  ;;  %v2153_v40 = vld [vmem:[%s2663_s30 + $0x14] sm:$0xf0] }
 0x5f9   : > { %1354 = vmatpush.bf16.msrb.mxu0 %v1977_v5  ;;  %v1925_v41 = vor.u32 %v2150_v36, %v1922_v38  ;;  %v1929_v42 = vor.u32 %v2153_v40, %v1928_v39  ;;  %v2194_v3 = vld [vmem:[%s2709_s29 + $0x60] sm:$0xff]  ;;  %v2193_v5 = vld [vmem:[%s2709_s29 + $0x58] sm:$0xff] }
 0x5fa   : > { %1104 = vmatmul.bf16.vlgmr.msrb.gmra.mxu1 %v1031_v7  ;;  %v1978_v7 = vld [vmem:[%s2663_s30 + $0x78] sm:$0xf0] }
 0x5fb   : > { %v1981_v8 = vor.u32 %v2163_v6, %v1978_v7  ;;  %v2184_v6 = vld [vmem:[%s2709_s29 + $0x10] sm:$0xff] }
 0x5fc   : > { %v2192_v7 = vld [vmem:[%s2709_s29 + $0x50] sm:$0xff] }
 0x5fd   : > { %1367 = vmatpush.bf16.msra.mxu1 %v1981_v8  ;;  %1355 = vmatpush.bf16.msrb.mxu0 %v1961_v17 }
 0x677   : > { %v1105_v21 = vpop.f32.mrf.mxu1 }
 0x678   : > { %v2837_v22 = vadd.f32 %v1105_v21, %v2712_v1  ;;  %v2021_v1 = vor.u32 %v2174_v27, %v2018_v29  ;;  %v1965_v21 = vor.u32 %v2159_v19, %v1962_v20  ;;  %v1938_v27 = vld [vmem:[%s2663_s30 + $0x30] sm:$0xf0]  ;;  %v2157_v29 = vld [vmem:[%s2663_s30 + $0x34] sm:$0xf0] }
 0x679   : > { %v1941_v30 = vor.u32 %v2154_v25, %v1938_v27  ;;  %v1945_v31 = vor.u32 %v2157_v29, %v1944_v28 }
 0x67a   : > { %v1111_v23 = vmul.f32 %v2837_v22, %v2837_v22  ;;  %1338 = vmatpush.bf16.msra.mxu3 %v2021_v1  ;;  %1368 = vmatpush.bf16.msra.mxu1 %v1965_v21  ;;  %v2155_v1 = vld [vmem:[%s2663_s30 + $0x2c] sm:$0xf] }
 0x67b   : > { %v1949_v33 = vor.u32 %v2155_v1, %v1946_v32  ;;  %1356 = vmatpush.bf16.msrb.mxu0 %v1945_v31 }
 0x67c   : > { %1112 = vadd.xlane.f32.xlu2 %v1111_v23  ;;  %v1936_v23 = vld [vmem:[%s2663_s30 + $0x20] sm:$0xf] }
 0x67e   : > { %1339 = vmatpush.bf16.msra.mxu3 %v2005_v43  ;;  %1369 = vmatpush.bf16.msra.mxu1 %v1949_v33  ;;  %v2151_v43 = vld [vmem:[%s2663_s30 + $0xc] sm:$0xf] }
 0x67f   : > { %v1107_v24 = vpop.f32.mrf.mxu1  ;;  %v1933_v45 = vor.u32 %v2151_v43, %v1930_v44  ;;  %1357 = vmatpush.bf16.msrb.mxu0 %v1929_v42 }
 0x680   : > { %v2156_v24 = vld [vmem:[%s2663_s30 + $0x2c] sm:$0xf0] }
 0x681   : > { %v1937_v26 = vor.u32 %v2156_v24, %v1936_v23 }
 0x682   : > { %1340 = vmatpush.bf16.msra.mxu3 %v1989_v56  ;;  %1370 = vmatpush.bf16.msra.mxu1 %v1933_v45 }
 0x683   : > { %1330 = vmatpush.bf16.msrb.mxu2 %v1937_v26 }
 0x686   : > { %1341 = vmatpush.bf16.msra.mxu3 %v1973_v4  ;;  %v2185_v4 = vld [vmem:[%s2709_s29 + $0x18] sm:$0xff] }
 0x687   : > { %1331 = vmatpush.bf16.msrb.mxu2 %v1921_v37 }
 0x68a   : > { %1342 = vmatpush.bf16.msra.mxu3 %v1957_v16 }
 0x68b   : > { %1548 = vmatpush.bf16.msra.mxu2 %v2189_v60 }
 0x68e   : > { %1343 = vmatpush.bf16.msra.mxu3 %v1941_v30 }
 0x68f   : > { %1549 = vmatpush.bf16.msra.mxu2 %v2188_v61 }
 0x692   : > { %1344 = vmatpush.bf16.msra.mxu3 %v1925_v41 }
 0x693   : > { %1550 = vmatpush.bf16.msra.mxu2 %v2187_v63 }
 0x696   : > { %1561 = vmatpush.bf16.msrb.mxu3 %v2197_v47 }
 0x697   : > { %1551 = vmatpush.bf16.msra.mxu2 %v2186_v2 }
 0x69a   : > { %1562 = vmatpush.bf16.msrb.mxu3 %v2196_v62 }
 0x69b   : > { %1552 = vmatpush.bf16.msra.mxu2 %v2185_v4 }
 0x69e   : > { %1563 = vmatpush.bf16.msrb.mxu3 %v2195_v0 }
 0x69f   : > { %1553 = vmatpush.bf16.msra.mxu2 %v2184_v6 }
 0x6a2   : > { %1564 = vmatpush.bf16.msrb.mxu3 %v2194_v3 }
 0x6a3   : > { %1554 = vmatpush.bf16.msra.mxu2 %v2183_v10 }
 0x6a6   : > { %1565 = vmatpush.bf16.msrb.mxu3 %v2193_v5 }
 0x6a7   : > { %1555 = vmatpush.bf16.msra.mxu2 %v2182_v12 }
 0x6aa   : > { %1566 = vmatpush.bf16.msrb.mxu3 %v2192_v7 }
 0x6ae   : > { %1567 = vmatpush.bf16.msrb.mxu3 %v2191_v11 }
 0x6b2   : > { %1568 = vmatpush.bf16.msrb.mxu3 %v2190_v13 }
 0x6ef   : > { %v1113_v46 = vpop.xlane.xlu2 %1112 }
 0x6f0   : > { %v1114_v48 = vmul.f32 %v1113_v46, %v2764_v18  ;;  %v2294_v18 = vld [vmem:[%s2998_s13] ss:$0 sm:$0xff] }
 0x6f2   : > { %v1115_v49 = vadd.f32 1e-06, %v1114_v48 }
 0x6f4   : > { %2307 = vrsqrt.f32 %v1115_v49  ;;  %vm1122_vm9 = vweird.f32 %v1115_v49 }
 0x6fa   : > { %v2308_v50 = vpop.eup %2307 }
 0x6fb   : > { %v1117_v51 = vmul.f32 %v2308_v50, %v1115_v49  ;;  %vm1123_vm8 = vweird.f32 %v2308_v50 }
 0x6fc   : > { %vm1124_vm10 = vmor %vm1122_vm9, %vm1123_vm8 }
 0x6fd   : > { %v1118_v52 = vmul.f32 %v2308_v50, %v1117_v51 }
 0x6ff   : > { %v1119_v53 = vmul.f32 0.5, %v1118_v52 }
 0x701   : > { %v1120_v54 = vsub.f32 1.5, %v1119_v53 }
 0x703   : > { %v1121_v55 = vmul.f32 %v2308_v50, %v1120_v54 }
 0x705   : > { %v1125_v56 = vsel %vm1124_vm10, %v2308_v50, %v1121_v55 }
 0x706   : > { %v1126_v57 = vmul.f32 %v1125_v56, %v2837_v22 }
 0x708   : > { %v1130_v58 = vmul.f32 %v2294_v18, %v1126_v57 }
 0x70a   : > { %v1131_v59 = vpack.c.bf16 %v1130_v58, %v1130_v58 }
 0x70c   : > { %1332 = vmatmul.bf16.vlgmr.msrb.gmra.mxu2 %v1131_v59  ;;  %1345 = vmatmul.bf16.vlgmr.msra.gmra.mxu3 %v1131_v59 }
 0x70d   : > { %1358 = vmatmul.bf16.vlgmr.msrb.gmra.mxu0 %v1131_v59  ;;  %1371 = vmatmul.bf16.vlgmr.msra.gmra.mxu1 %v1131_v59 }
 0x78a   : > { %v1359_v8 = vpop.f32.mrf.mxu0  ;;  %v1372_v9 = vpop.f32.mrf.mxu1 }
 0x78f   : > { %v1333_v14 = vpop.f32.mrf.mxu2  ;;  %v1346_v15 = vpop.f32.mrf.mxu3 }
 0x790   : > { %v2046_v16 = vmul.f32 -1.442695, %v1333_v14  ;;  %v2047_v17 = vmul.f32 -1.442695, %v1346_v15 }
 0x792   : > { %2309 = vpow2.f32 %v2046_v16  ;;  %v1361_v19 = vpop.f32.mrf.mxu0  ;;  %v1374_v20 = vpop.f32.mrf.mxu1 }
 0x793   : > { %2311 = vpow2.f32 %v2047_v17 }
 0x797   : > { %v1335_v21 = vpop.f32.mrf.mxu2  ;;  %v1348_v23 = vpop.f32.mrf.mxu3 }
 0x798   : > { %v2310_v24 = vpop.eup %2309 }
 0x799   : > { %v2312_v25 = vpop.eup %2311  ;;  %v1382_v26 = vadd.f32 1.0, %v2310_v24 }
 0x79a   : > { %v1383_v27 = vadd.f32 1.0, %v2312_v25 }
 0x79b   : > { %2313 = vrcp.f32 %v1382_v26  ;;  %v1395_v32 = vand.u32 2147483648, %v1382_v26  ;;  %v1393_v35 = vand.u32 2147483647, %v1382_v26  ;;  %vm1389_vm13 = vweird.f32 %v1382_v26 }
 0x79c   : > { %2315 = vrcp.f32 %v1383_v27  ;;  %v1410_v36 = vand.u32 2147483648, %v1383_v27  ;;  %v1408_v38 = vand.u32 2147483647, %v1383_v27  ;;  %vm1404_vm15 = vweird.f32 %v1383_v27 }
 0x79d   : > { %v1396_v40 = vor.u32 1.1754944e-38, %v1395_v32  ;;  %vm1394_vm0 = vcmp.eq.f32.partialorder %v1393_v35, 8.507059e+37 }
 0x79e   : > { %v1411_v43 = vor.u32 1.1754944e-38, %v1410_v36  ;;  %vm1409_vm2 = vcmp.eq.f32.partialorder %v1408_v38, 8.507059e+37 }
 0x7a1   : > { %v2314_v28 = vpop.eup %2313 }
 0x7a2   : > { %v2316_v29 = vpop.eup %2315  ;;  %v1385_v30 = vmul.f32 %v2314_v28, %v1382_v26  ;;  %vm1390_vm11 = vweird.f32 %v2314_v28 }
 0x7a3   : > { %v1400_v31 = vmul.f32 %v2316_v29, %v1383_v27  ;;  %vm1405_vm12 = vweird.f32 %v2316_v29  ;;  %vm1391_vm14 = vmor %vm1389_vm13, %vm1390_vm11 }
 0x7a4   : > { %v1386_v1 = vsub.f32 1.0, %v1385_v30  ;;  %vm1406_vm1 = vmor %vm1404_vm15, %vm1405_vm12 }
 0x7a5   : > { %v1401_v33 = vsub.f32 1.0, %v1400_v31 }
 0x7a6   : > { %v1387_v34 = vmul.f32 %v2314_v28, %v1386_v1 }
 0x7a7   : > { %v1402_v37 = vmul.f32 %v2316_v29, %v1401_v33 }
 0x7a8   : > { %v1388_v39 = vadd.f32 %v2314_v28, %v1387_v34 }
 0x7a9   : > { %v1403_v41 = vadd.f32 %v2316_v29, %v1402_v37 }
 0x7aa   : > { %v1392_v42 = vsel %vm1391_vm14, %v2314_v28, %v1388_v39 }
 0x7ab   : > { %v1397_v44 = vsel %vm1394_vm0, %v1396_v40, %v1392_v42  ;;  %v1407_v45 = vsel %vm1406_vm1, %v2316_v29, %v1403_v41 }
 0x7ac   : > { %v1414_v46 = vmul.f32 %v1397_v44, %v1333_v14  ;;  %v1412_v48 = vsel %vm1409_vm2, %v1411_v43, %v1407_v45 }
 0x7ad   : > { %v1415_v49 = vmul.f32 %v1412_v48, %v1346_v15 }
 0x7ae   : > { %v1416_v50 = vmul.f32 %v1414_v46, %v1359_v8 }
 0x7af   : > { %v1417_v51 = vmul.f32 %v1415_v49, %v1372_v9 }
 0x7b0   : > { %v1418_v52 = vpack.c.bf16 %v1416_v50, %v1416_v50 }
 0x7b1   : > { %v1419_v53 = vpack.c.bf16 %v1417_v51, %v1417_v51 }
 0x7b2   : > { %1556 = vmatmul.bf16.vlgmr.msra.gmra.mxu2 %v1418_v52 }
 0x7b3   : > { %1569 = vmatmul.bf16.vlgmr.msrb.gmra.mxu3 %v1419_v53 }
 0x835   : > { %v1557_v54 = vpop.f32.mrf.mxu2 }
 0x836   : > { %v1570_v55 = vpop.f32.mrf.mxu3 }
 0x837   : > { %v1571_v18 = vadd.f32 %v1570_v55, %v1557_v54 }
 0x839   : > { %v1574_v56 = vadd.f32 %v1571_v18, %v2837_v22 }
 0x83a   : > { %1579 = sbr.rel (%p2112_p3) target bundleno = 2112 (0x840), region = 84 }
 0x83b   : > { %1575 = vst [vmem:[#allocation2] sm:$0xff] %v1574_v56 }
 0x83d   : > { %v1559_v57 = vpop.f32.mrf.mxu2 }
 0x83e   : > { %v1572_v58 = vpop.f32.mrf.mxu3 }
 0x83f   : > { %1580 = vst [vmem:[%s598_s28] sm:$0xff] %v1574_v56 }
 0x840 PF: > { %s27_s24 = sadd.s32 1, %s2477_s24   ;;  %s3000_s16 = sld [smem:[#allocation10_spill]] }
 0x841   : > { %p24_p4 = scmp.ge.s32.totalorder %s27_s24, 6   ;;  %s3001_s19 = sld [smem:[#allocation14_spill]] }
 0x842   : > { %s3002_s21 = sld [smem:[#allocation11_spill]]  ;;  %s3005_s17 = smov %s2453_s18 }
 0x843   : > { %s3003_s25 = sld [smem:[#allocation12_spill]]  ;;  %s3007_s20 = smov %s2469_s22 }
 0x844   : > { %s3004_s23 = sld [smem:[#allocation13_spill]] }
 0x845   :  { %26 = sbr.rel (!%p24_p4) target bundleno = 18 (0x12), region = 154 }
 0x846   : > { %s3006_s18 = smov %s3000_s16 }
 0x849   : > { %s3008_s22 = smov %s3003_s25 }
 0x84a   :  { %1600 = vsyncpa [#allocation4], 1 }
 0x84b   :  { %1602 = vsyncpa [#allocation4 + $0x1], 1 }
 0x84c   :  { %1603 = vsyncpa [#allocation6], 1 }
 0x84d   :  { %1605 = vsyncpa [#allocation6 + $0x1], 1 }

</bundles_post_ra>
